<compile_context>
chip_gen: v6e
topology: v6e:2x2x1
jax: 0.10.0
libtpu: 0.0.40
codegen_flags: <defaults>
</compile_context>

<pallas_src>
import functools

import jax
import jax.numpy as jnp
from jax import lax
from jax.experimental import pallas as pl
from jax.experimental.pallas import tpu as pltpu


def self_attention_kernel(
    xf_ref,                       # (1, N, D)  bf16 full sequence (K/V source)
    xq_ref,                       # (1, tq, D) bf16 query tile
    wq_ref, bq_ref,               # (D, H*hd) bf16, (1, H*hd) f32 (pre-scaled)
    wk_ref, bk_ref,               # (D, H*hd) bf16, (1, H*hd) f32
    wv_ref, bv_ref,               # (D, H*hd) bf16, (1, H*hd) f32
    wo_ref, bo_ref,               # (H*hd, D) bf16, (1, D) f32
    o_ref,                        # (1, tq, D) f32
    k_cache, v_cache,             # (H, N, hd)  bf16 VMEM scratch
    q_scratch,                    # (H, tq, hd) bf16 VMEM scratch
    o_scratch,                    # (H, tq, hd) bf16 VMEM scratch
    *, num_heads, head_dim,
):
    H, hd = num_heads, head_dim
    N = xf_ref.shape[1]
    tq = xq_ref.shape[1]
    qi = pl.program_id(1)

    # ---- K / V projection: once per batch element (first q tile) -----------
    @pl.when(qi == 0)
    def _():
        xf = xf_ref[0]                                               # (N, D) bf16
        k = jnp.dot(xf, wk_ref[...],
                    preferred_element_type=jnp.float32) + bk_ref[...]
        v = jnp.dot(xf, wv_ref[...],
                    preferred_element_type=jnp.float32) + bv_ref[...]
        k_cache[...] = k.reshape(N, H, hd).transpose(1, 0, 2).astype(jnp.bfloat16)
        v_cache[...] = v.reshape(N, H, hd).transpose(1, 0, 2).astype(jnp.bfloat16)

    # ---- Q projection (1/sqrt(head_dim) folded into wq/bq in the wrapper) --
    xq = xq_ref[0]                                                   # (tq, D) bf16
    q = jnp.dot(xq, wq_ref[...],
                preferred_element_type=jnp.float32) + bq_ref[...]    # (tq, H*hd)
    q_scratch[...] = q.reshape(tq, H, hd).transpose(1, 0, 2).astype(jnp.bfloat16)

    # ---- Attention, one head at a time: only a (tq, N) score tile is live --
    @pl.loop(0, H)
    def _(h):
        q_h = q_scratch[h]                                           # (tq, hd)
        k_h = k_cache[h]                                             # (N, hd)
        v_h = v_cache[h]                                             # (N, hd)
        s = lax.dot_general(q_h, k_h, (((1,), (1,)), ((), ())),
                            preferred_element_type=jnp.float32)      # (tq, N)
        s = s - jnp.max(s, axis=-1, keepdims=True)
        p = jnp.exp(s)
        denom = jnp.sum(p, axis=-1, keepdims=True)                   # (tq, 1)
        o_h = lax.dot_general(p.astype(jnp.bfloat16), v_h,
                              (((1,), (0,)), ((), ())),
                              preferred_element_type=jnp.float32)    # (tq, hd)
        # Deferred softmax normalization: scale the small PV result, not p.
        o_h = o_h * pl.reciprocal(denom, approx=True)
        o_scratch[h] = o_h.astype(jnp.bfloat16)

    # ---- Output projection (single (tq, H*hd) re-gather, full-K matmul) ----
    o2 = o_scratch[...].transpose(1, 0, 2).reshape(tq, H * hd)       # bf16
    out = jnp.dot(o2, wo_ref[...],
                  preferred_element_type=jnp.float32) + bo_ref[...]
    o_ref[0] = out


def self_attention(x, params, *, num_heads, q_tile=None,
                   single_buffer_weights=True):
    B, N, D = x.shape
    H = num_heads
    hd = D // H
    HD = H * hd
    assert HD == D, "in_dim must be divisible by heads"

    if q_tile is None:
        q_tile = N if N <= 128 else 128
    assert N % q_tile == 0, "seq len must be divisible by q_tile"
    nq = N // q_tile

    # Kernel consumes bf16 activations (it was casting to bf16 internally
    # anyway) -> halves HBM read traffic and VMEM residency for x blocks.
    xb = x.astype(jnp.bfloat16)

    # Fold 1/sqrt(head_dim) into the query projection; weights -> bf16 for the
    # MXU (f32 accumulation in-kernel), small biases stay f32.
    inv_scale = 1.0 / (hd ** 0.5)
    wq = (params["wq"].reshape(D, HD) * inv_scale).astype(jnp.bfloat16)
    bq = (params["bq"].reshape(1, HD) * inv_scale).astype(jnp.float32)
    wk = params["wk"].reshape(D, HD).astype(jnp.bfloat16)
    bk = params["bk"].reshape(1, HD).astype(jnp.float32)
    wv = params["wv"].reshape(D, HD).astype(jnp.bfloat16)
    bv = params["bv"].reshape(1, HD).astype(jnp.float32)
    wo = params["wo"].reshape(HD, D).astype(jnp.bfloat16)
    bo = params["bo"].reshape(1, D).astype(jnp.float32)

    def const_spec(shape):
        # Constant index_map -> block never changes; single-buffer it so the
        # weights don't cost 2x VMEM.
        if single_buffer_weights:
            return pl.BlockSpec(shape, lambda b, qi: (0,) * len(shape),
                                pipeline_mode=pl.Buffered(1))
        return pl.BlockSpec(shape, lambda b, qi: (0,) * len(shape))

    # Generation-aware VMEM budget: ~75% of physical capacity as the ceiling
    # (v7x: 64 MiB physical -> ~48 MiB cap; v5e/v6e: 128 MiB -> ~96 MiB cap).
    try:
        vmem_cap = int(pltpu.get_tpu_info().vmem_capacity_bytes)
    except Exception:
        vmem_cap = 64 * 1024 * 1024
    vmem_ceiling = (vmem_cap * 3) // 4

    wbuf = 1 if single_buffer_weights else 2
    weight_bytes = wbuf * (4 * D * HD * 2 + (3 * HD + D) * 4)
    act_in_bytes = 2 * (N * D + q_tile * D) * 2            # bf16, double-buffered
    act_out_bytes = 2 * q_tile * D * 4                      # f32 output, 2x buffered
    scratch_bytes = (2 * H * N * hd + 2 * H * q_tile * hd) * 2
    work_bytes = (2 * N * HD + q_tile * N + 6 * q_tile * D) * 4   # proj temps, score tile
    vmem_need = int(1.5 * (weight_bytes + act_in_bytes + act_out_bytes
                           + scratch_bytes + work_bytes))
    vmem_limit = int(min(max(vmem_need, 16 * 1024 * 1024), vmem_ceiling))

    kernel = functools.partial(self_attention_kernel,
                               num_heads=H, head_dim=hd)

    return pl.pallas_call(
        kernel,
        out_shape=jax.ShapeDtypeStruct((B, N, D), jnp.float32),
        grid_spec=pltpu.PrefetchScalarGridSpec(
            num_scalar_prefetch=0,
            grid=(B, nq),
            in_specs=[
                pl.BlockSpec((1, N, D), lambda b, qi: (b, 0, 0)),        # x (K/V)
                pl.BlockSpec((1, q_tile, D), lambda b, qi: (b, qi, 0)),  # x (Q tile)
                const_spec((D, HD)), const_spec((1, HD)),                # Wq, bq
                const_spec((D, HD)), const_spec((1, HD)),                # Wk, bk
                const_spec((D, HD)), const_spec((1, HD)),                # Wv, bv
                const_spec((HD, D)), const_spec((1, D)),                 # Wo, bo
            ],
            out_specs=pl.BlockSpec((1, q_tile, D), lambda b, qi: (b, qi, 0)),
            scratch_shapes=[
                pltpu.VMEM((H, N, hd), jnp.bfloat16),                    # K cache
                pltpu.VMEM((H, N, hd), jnp.bfloat16),                    # V cache
                pltpu.VMEM((H, q_tile, hd), jnp.bfloat16),               # Q (per head)
                pltpu.VMEM((H, q_tile, hd), jnp.bfloat16),               # O (per head)
            ],
        ),
        compiler_params=pltpu.CompilerParams(
            dimension_semantics=("parallel", "arbitrary"),
            vmem_limit_bytes=vmem_limit,
        ),
    )(xb, xb, wq, bq, wk, bk, wv, bv, wo, bo)


def self_attention_ref(x, params, *, num_heads):
    """Pure-JAX f32 reference of the PyTorch SelfAttention forward."""
    B, N, D = x.shape
    H = num_heads
    hd = D // H
    q = jnp.einsum("bnd,dhk->bnhk", x, params["wq"]) + params["bq"]
    k = jnp.einsum("bnd,dhk->bnhk", x, params["wk"]) + params["bk"]
    v = jnp.einsum("bnd,dhk->bnhk", x, params["wv"]) + params["bv"]
    q = q.transpose(0, 2, 1, 3)
    k = k.transpose(0, 2, 1, 3)
    v = v.transpose(0, 2, 1, 3)
    aw = jnp.einsum("bhqd,bhkd->bhqk", q, k) / (hd ** 0.5)
    aw = jax.nn.softmax(aw, axis=-1)
    o = jnp.einsum("bhqk,bhkd->bhqd", aw, v).transpose(0, 2, 1, 3)   # (B,N,H,hd)
    return jnp.einsum("bnhk,hkd->bnd", o, params["wo"]) + params["bo"]


if __name__ == "__main__":
    B, N, D, H = 2, 16, 32, 4          # batch, seq, in_dim, heads
    hd = D // H

    key = jax.random.PRNGKey(0)
    ks = jax.random.split(key, 9)
    x = jax.random.normal(ks[0], (B, N, D), dtype=jnp.float32)

    s = 0.05
    params = {
        "wq": s * jax.random.normal(ks[1], (D, H, hd), jnp.float32),
        "bq": s * jax.random.normal(ks[2], (H, hd), jnp.float32),
        "wk": s * jax.random.normal(ks[3], (D, H, hd), jnp.float32),
        "bk": s * jax.random.normal(ks[4], (H, hd), jnp.float32),
        "wv": s * jax.random.normal(ks[5], (D, H, hd), jnp.float32),
        "bv": s * jax.random.normal(ks[6], (H, hd), jnp.float32),
        "wo": s * jax.random.normal(ks[7], (H, hd, D), jnp.float32),
        "bo": s * jax.random.normal(ks[8], (D,), jnp.float32),
    }

    # q_tile=8 with N=16 exercises the multi-q-tile path (2 tiles per batch).
    try:
        out = jax.block_until_ready(
            self_attention(x, params, num_heads=H, q_tile=8))
    except Exception:
        # Fallback if pl.Buffered(1) single-buffering is rejected by this jax
        # version: identical kernel with default double-buffered weight specs.
        out = jax.block_until_ready(
            self_attention(x, params, num_heads=H, q_tile=8,
                           single_buffer_weights=False))

    ref = self_attention_ref(x, params, num_heads=H)
    assert out.shape == (B, N, D)
    err = float(jnp.max(jnp.abs(out - ref)))
    assert jnp.allclose(out, ref, atol=1e-2, rtol=1e-2), f"max diff {err}"
    print("KERNEL_OK")
</pallas_src>

<mosaic_0001>
module attributes {stable_mosaic.version = 11 : i64} {
  func.func @self_attention_kernel(%arg0: i32, %arg1: i32, %arg2: memref<1x16x32xbf16, #tpu.memory_space<vmem>>, %arg3: memref<1x8x32xbf16, #tpu.memory_space<vmem>>, %arg4: memref<32x32xbf16, #tpu.memory_space<vmem>>, %arg5: memref<1x32xf32, #tpu.memory_space<vmem>>, %arg6: memref<32x32xbf16, #tpu.memory_space<vmem>>, %arg7: memref<1x32xf32, #tpu.memory_space<vmem>>, %arg8: memref<32x32xbf16, #tpu.memory_space<vmem>>, %arg9: memref<1x32xf32, #tpu.memory_space<vmem>>, %arg10: memref<32x32xbf16, #tpu.memory_space<vmem>>, %arg11: memref<1x32xf32, #tpu.memory_space<vmem>>, %arg12: memref<1x8x32xf32, #tpu.memory_space<vmem>>, %arg13: memref<4x16x8xbf16, #tpu.memory_space<vmem>>, %arg14: memref<4x16x8xbf16, #tpu.memory_space<vmem>>, %arg15: memref<4x8x8xbf16, #tpu.memory_space<vmem>>, %arg16: memref<4x8x8xbf16, #tpu.memory_space<vmem>>) attributes {dimension_semantics = [#tpu.dimension_semantics<parallel>, #tpu.dimension_semantics<arbitrary>], iteration_bounds = array<i64: 2, 2>, scalar_prefetch = 0 : i64, scratch_operands = 4 : i64, tpu.core_type = #tpu.core_type<tc>, window_params = [{transform_indices = @transform_0, window_bounds = array<i64: 1, 16, 32>}, {transform_indices = @transform_1, window_bounds = array<i64: 1, 8, 32>}, {pipeline_mode = #tpu.pipeline_mode<synchronous>, transform_indices = @transform_2, window_bounds = array<i64: 32, 32>}, {pipeline_mode = #tpu.pipeline_mode<synchronous>, transform_indices = @transform_3, window_bounds = array<i64: 1, 32>}, {pipeline_mode = #tpu.pipeline_mode<synchronous>, transform_indices = @transform_4, window_bounds = array<i64: 32, 32>}, {pipeline_mode = #tpu.pipeline_mode<synchronous>, transform_indices = @transform_5, window_bounds = array<i64: 1, 32>}, {pipeline_mode = #tpu.pipeline_mode<synchronous>, transform_indices = @transform_6, window_bounds = array<i64: 32, 32>}, {pipeline_mode = #tpu.pipeline_mode<synchronous>, transform_indices = @transform_7, window_bounds = array<i64: 1, 32>}, {pipeline_mode = #tpu.pipeline_mode<synchronous>, transform_indices = @transform_8, window_bounds = array<i64: 32, 32>}, {pipeline_mode = #tpu.pipeline_mode<synchronous>, transform_indices = @transform_9, window_bounds = array<i64: 1, 32>}, {transform_indices = @transform_10, window_bounds = array<i64: 1, 8, 32>}]} {
    %c0_i32 = arith.constant 0 : i32
    %0 = arith.cmpi eq, %arg1, %c0_i32 : i32
    %1 = arith.extui %0 : i1 to i32
    %c0_i32_0 = arith.constant 0 : i32
    %2 = arith.cmpi ne, %1, %c0_i32_0 : i32
    scf.if %2 {
      %c0_23 = arith.constant 0 : index
      %c0_24 = arith.constant 0 : index
      %c0_25 = arith.constant 0 : index
      %26 = vector.load %arg2[%c0_23, %c0_24, %c0_25] : memref<1x16x32xbf16, #tpu.memory_space<vmem>>, vector<1x16x32xbf16>
      %27 = vector.shape_cast %26 : vector<1x16x32xbf16> to vector<16x32xbf16>
      %c0_26 = arith.constant 0 : index
      %c0_27 = arith.constant 0 : index
      %28 = vector.load %arg6[%c0_26, %c0_27] : memref<32x32xbf16, #tpu.memory_space<vmem>>, vector<32x32xbf16>
      %cst_28 = arith.constant dense<0.000000e+00> : vector<16x32xf32>
      %29 = tpu.matmul %27, %28, %cst_28 {dimension_numbers = #tpu.dot_dimension_numbers<[1], [0], [0], [1], [0, 0, 1, 1], [], []>} : vector<16x32xbf16>, vector<32x32xbf16>, vector<16x32xf32> -> vector<16x32xf32>
      %c0_29 = arith.constant 0 : index
      %c0_30 = arith.constant 0 : index
      %30 = vector.load %arg7[%c0_29, %c0_30] : memref<1x32xf32, #tpu.memory_space<vmem>>, vector<1x32xf32>
      %31 = vector.broadcast %30 : vector<1x32xf32> to vector<16x32xf32>
      %32 = arith.addf %29, %31 : vector<16x32xf32>
      %c0_31 = arith.constant 0 : index
      %c0_32 = arith.constant 0 : index
      %33 = vector.load %arg8[%c0_31, %c0_32] : memref<32x32xbf16, #tpu.memory_space<vmem>>, vector<32x32xbf16>
      %cst_33 = arith.constant dense<0.000000e+00> : vector<16x32xf32>
      %34 = tpu.matmul %27, %33, %cst_33 {dimension_numbers = #tpu.dot_dimension_numbers<[1], [0], [0], [1], [0, 0, 1, 1], [], []>} : vector<16x32xbf16>, vector<32x32xbf16>, vector<16x32xf32> -> vector<16x32xf32>
      %c0_34 = arith.constant 0 : index
      %c0_35 = arith.constant 0 : index
      %35 = vector.load %arg9[%c0_34, %c0_35] : memref<1x32xf32, #tpu.memory_space<vmem>>, vector<1x32xf32>
      %36 = vector.broadcast %35 : vector<1x32xf32> to vector<16x32xf32>
      %37 = arith.addf %34, %36 : vector<16x32xf32>
      %38 = vector.shape_cast %32 : vector<16x32xf32> to vector<16x4x8xf32>
      %39 = tpu.transpose %38, [1, 0, 2] : vector<16x4x8xf32> -> vector<4x16x8xf32>
      %40 = arith.truncf %39 : vector<4x16x8xf32> to vector<4x16x8xbf16>
      %c0_36 = arith.constant 0 : index
      %c0_37 = arith.constant 0 : index
      %c0_38 = arith.constant 0 : index
      %41 = vector.load %arg13[%c0_36, %c0_37, %c0_38] : memref<4x16x8xbf16, #tpu.memory_space<vmem>>, vector<4x16x8xbf16>
      tpu.vector_store %arg13[%c0_36, %c0_37, %c0_38], %40 {strides = array<i32>} : memref<4x16x8xbf16, #tpu.memory_space<vmem>>, vector<4x16x8xbf16>,
      %42 = vector.shape_cast %37 : vector<16x32xf32> to vector<16x4x8xf32>
      %43 = tpu.transpose %42, [1, 0, 2] : vector<16x4x8xf32> -> vector<4x16x8xf32>
      %44 = arith.truncf %43 : vector<4x16x8xf32> to vector<4x16x8xbf16>
      %c0_39 = arith.constant 0 : index
      %c0_40 = arith.constant 0 : index
      %c0_41 = arith.constant 0 : index
      %45 = vector.load %arg14[%c0_39, %c0_40, %c0_41] : memref<4x16x8xbf16, #tpu.memory_space<vmem>>, vector<4x16x8xbf16>
      tpu.vector_store %arg14[%c0_39, %c0_40, %c0_41], %44 {strides = array<i32>} : memref<4x16x8xbf16, #tpu.memory_space<vmem>>, vector<4x16x8xbf16>,
    } else {
    }
    %c0 = arith.constant 0 : index
    %c0_1 = arith.constant 0 : index
    %c0_2 = arith.constant 0 : index
    %3 = vector.load %arg3[%c0, %c0_1, %c0_2] : memref<1x8x32xbf16, #tpu.memory_space<vmem>>, vector<1x8x32xbf16>
    %4 = vector.shape_cast %3 : vector<1x8x32xbf16> to vector<8x32xbf16>
    %c0_3 = arith.constant 0 : index
    %c0_4 = arith.constant 0 : index
    %5 = vector.load %arg4[%c0_3, %c0_4] : memref<32x32xbf16, #tpu.memory_space<vmem>>, vector<32x32xbf16>
    %cst = arith.constant dense<0.000000e+00> : vector<8x32xf32>
    %6 = tpu.matmul %4, %5, %cst {dimension_numbers = #tpu.dot_dimension_numbers<[1], [0], [0], [1], [0, 0, 1, 1], [], []>} : vector<8x32xbf16>, vector<32x32xbf16>, vector<8x32xf32> -> vector<8x32xf32>
    %c0_5 = arith.constant 0 : index
    %c0_6 = arith.constant 0 : index
    %7 = vector.load %arg5[%c0_5, %c0_6] : memref<1x32xf32, #tpu.memory_space<vmem>>, vector<1x32xf32>
    %8 = vector.broadcast %7 : vector<1x32xf32> to vector<8x32xf32>
    %9 = arith.addf %6, %8 : vector<8x32xf32>
    %10 = vector.shape_cast %9 : vector<8x32xf32> to vector<8x4x8xf32>
    %11 = tpu.transpose %10, [1, 0, 2] : vector<8x4x8xf32> -> vector<4x8x8xf32>
    %12 = arith.truncf %11 : vector<4x8x8xf32> to vector<4x8x8xbf16>
    %c0_7 = arith.constant 0 : index
    %c0_8 = arith.constant 0 : index
    %c0_9 = arith.constant 0 : index
    %13 = vector.load %arg15[%c0_7, %c0_8, %c0_9] : memref<4x8x8xbf16, #tpu.memory_space<vmem>>, vector<4x8x8xbf16>
    tpu.vector_store %arg15[%c0_7, %c0_8, %c0_9], %12 {strides = array<i32>} : memref<4x8x8xbf16, #tpu.memory_space<vmem>>, vector<4x8x8xbf16>,
    %c0_i32_10 = arith.constant 0 : i32
    %c4_i32 = arith.constant 4 : i32
    %14 = arith.addi %c0_i32_10, %c4_i32 : i32
    %c1_i32 = arith.constant 1 : i32
    scf.for %arg17 = %c0_i32_10 to %14 step %c1_i32  : i32 {
      %c1_i32_23 = arith.constant 1 : i32
      %26 = arith.muli %arg17, %c1_i32_23 : i32
      %c0_i32_24 = arith.constant 0 : i32
      %27 = arith.addi %c0_i32_24, %26 : i32
      %28 = arith.index_cast %27 : i32 to index
      %c0_25 = arith.constant 0 : index
      %c0_26 = arith.constant 0 : index
      %29 = vector.load %arg15[%28, %c0_25, %c0_26] : memref<4x8x8xbf16, #tpu.memory_space<vmem>>, vector<1x8x8xbf16>
      %30 = vector.shape_cast %29 : vector<1x8x8xbf16> to vector<8x8xbf16>
      %31 = arith.index_cast %27 : i32 to index
      %c0_27 = arith.constant 0 : index
      %c0_28 = arith.constant 0 : index
      %32 = vector.load %arg13[%31, %c0_27, %c0_28] : memref<4x16x8xbf16, #tpu.memory_space<vmem>>, vector<1x16x8xbf16>
      %33 = vector.shape_cast %32 : vector<1x16x8xbf16> to vector<16x8xbf16>
      %34 = arith.index_cast %27 : i32 to index
      %c0_29 = arith.constant 0 : index
      %c0_30 = arith.constant 0 : index
      %35 = vector.load %arg14[%34, %c0_29, %c0_30] : memref<4x16x8xbf16, #tpu.memory_space<vmem>>, vector<1x16x8xbf16>
      %36 = vector.shape_cast %35 : vector<1x16x8xbf16> to vector<16x8xbf16>
      %cst_31 = arith.constant dense<0.000000e+00> : vector<8x16xf32>
      %37 = tpu.matmul %30, %33, %cst_31 {dimension_numbers = #tpu.dot_dimension_numbers<[1], [1], [0], [0], [0, 0, 1, 0], [], []>} : vector<8x8xbf16>, vector<16x8xbf16>, vector<8x16xf32> -> vector<8x16xf32>
      %cst_32 = arith.constant dense<0xFF800000> : vector<8xf32>
      %38 = vector.multi_reduction <maximumf>, %37, %cst_32 [1] : vector<8x16xf32> to vector<8xf32>
      %39 = vector.shape_cast %38 : vector<8xf32> to vector<8x1xf32>
      %40 = vector.broadcast %39 : vector<8x1xf32> to vector<8x16xf32>
      %41 = arith.subf %37, %40 : vector<8x16xf32>
      %42 = math.exp %41 : vector<8x16xf32>
      %cst_33 = arith.constant dense<0.000000e+00> : vector<8xf32>
      %43 = vector.multi_reduction <add>, %42, %cst_33 [1] : vector<8x16xf32> to vector<8xf32>
      %44 = vector.shape_cast %43 : vector<8xf32> to vector<8x1xf32>
      %45 = arith.truncf %42 : vector<8x16xf32> to vector<8x16xbf16>
      %cst_34 = arith.constant dense<0.000000e+00> : vector<8x8xf32>
      %46 = tpu.matmul %45, %36, %cst_34 {dimension_numbers = #tpu.dot_dimension_numbers<[1], [0], [0], [1], [0, 0, 1, 1], [], []>} : vector<8x16xbf16>, vector<16x8xbf16>, vector<8x8xf32> -> vector<8x8xf32>
      %47 = tpu.reciprocal %44 {approx = true} : vector<8x1xf32> -> vector<8x1xf32>
      %48 = vector.broadcast %47 : vector<8x1xf32> to vector<8x8xf32>
      %49 = arith.mulf %46, %48 : vector<8x8xf32>
      %50 = arith.truncf %49 : vector<8x8xf32> to vector<8x8xbf16>
      %51 = arith.index_cast %27 : i32 to index
      %c0_35 = arith.constant 0 : index
      %c0_36 = arith.constant 0 : index
      %52 = vector.load %arg16[%51, %c0_35, %c0_36] : memref<4x8x8xbf16, #tpu.memory_space<vmem>>, vector<1x8x8xbf16>
      %53 = vector.shape_cast %52 : vector<1x8x8xbf16> to vector<8x8xbf16>
      %54 = vector.shape_cast %50 : vector<8x8xbf16> to vector<1x8x8xbf16>
      tpu.vector_store %arg16[%51, %c0_35, %c0_36], %54 {strides = array<i32>} : memref<4x8x8xbf16, #tpu.memory_space<vmem>>, vector<1x8x8xbf16>,
    }
    %c4_i32_11 = arith.constant 4 : i32
    %c0_12 = arith.constant 0 : index
    %c0_13 = arith.constant 0 : index
    %c0_14 = arith.constant 0 : index
    %15 = vector.load %arg16[%c0_12, %c0_13, %c0_14] : memref<4x8x8xbf16, #tpu.memory_space<vmem>>, vector<4x8x8xbf16>
    %16 = tpu.transpose %15, [1, 0, 2] : vector<4x8x8xbf16> -> vector<8x4x8xbf16>
    %17 = vector.shape_cast %16 : vector<8x4x8xbf16> to vector<8x32xbf16>
    %c0_15 = arith.constant 0 : index
    %c0_16 = arith.constant 0 : index
    %18 = vector.load %arg10[%c0_15, %c0_16] : memref<32x32xbf16, #tpu.memory_space<vmem>>, vector<32x32xbf16>
    %cst_17 = arith.constant dense<0.000000e+00> : vector<8x32xf32>
    %19 = tpu.matmul %17, %18, %cst_17 {dimension_numbers = #tpu.dot_dimension_numbers<[1], [0], [0], [1], [0, 0, 1, 1], [], []>} : vector<8x32xbf16>, vector<32x32xbf16>, vector<8x32xf32> -> vector<8x32xf32>
    %c0_18 = arith.constant 0 : index
    %c0_19 = arith.constant 0 : index
    %20 = vector.load %arg11[%c0_18, %c0_19] : memref<1x32xf32, #tpu.memory_space<vmem>>, vector<1x32xf32>
    %21 = vector.broadcast %20 : vector<1x32xf32> to vector<8x32xf32>
    %22 = arith.addf %19, %21 : vector<8x32xf32>
    %c0_20 = arith.constant 0 : index
    %c0_21 = arith.constant 0 : index
    %c0_22 = arith.constant 0 : index
    %23 = vector.load %arg12[%c0_20, %c0_21, %c0_22] : memref<1x8x32xf32, #tpu.memory_space<vmem>>, vector<1x8x32xf32>
    %24 = vector.shape_cast %23 : vector<1x8x32xf32> to vector<8x32xf32>
    %25 = vector.shape_cast %22 : vector<8x32xf32> to vector<1x8x32xf32>
    tpu.vector_store %arg12[%c0_20, %c0_21, %c0_22], %25 {strides = array<i32>} : memref<1x8x32xf32, #tpu.memory_space<vmem>>, vector<1x8x32xf32>,
    return
  }
  func.func @transform_0(%arg0: i32, %arg1: i32) -> (i32, i32, i32) {
    %c0_i32 = arith.constant 0 : i32
    %c0_i32_0 = arith.constant 0 : i32
    %c0_i32_1 = arith.constant 0 : i32
    return %arg0, %c0_i32, %c0_i32_0 : i32, i32, i32
  }
  func.func @transform_1(%arg0: i32, %arg1: i32) -> (i32, i32, i32) {
    %c0_i32 = arith.constant 0 : i32
    %c0_i32_0 = arith.constant 0 : i32
    return %arg0, %arg1, %c0_i32 : i32, i32, i32
  }
  func.func @transform_2(%arg0: i32, %arg1: i32) -> (i32, i32) {
    %c0_i32 = arith.constant 0 : i32
    %c0_i32_0 = arith.constant 0 : i32
    %c0_i32_1 = arith.constant 0 : i32
    return %c0_i32, %c0_i32_0 : i32, i32
  }
  func.func @transform_3(%arg0: i32, %arg1: i32) -> (i32, i32) {
    %c0_i32 = arith.constant 0 : i32
    %c0_i32_0 = arith.constant 0 : i32
    %c0_i32_1 = arith.constant 0 : i32
    return %c0_i32, %c0_i32_0 : i32, i32
  }
  func.func @transform_4(%arg0: i32, %arg1: i32) -> (i32, i32) {
    %c0_i32 = arith.constant 0 : i32
    %c0_i32_0 = arith.constant 0 : i32
    %c0_i32_1 = arith.constant 0 : i32
    return %c0_i32, %c0_i32_0 : i32, i32
  }
  func.func @transform_5(%arg0: i32, %arg1: i32) -> (i32, i32) {
    %c0_i32 = arith.constant 0 : i32
    %c0_i32_0 = arith.constant 0 : i32
    %c0_i32_1 = arith.constant 0 : i32
    return %c0_i32, %c0_i32_0 : i32, i32
  }
  func.func @transform_6(%arg0: i32, %arg1: i32) -> (i32, i32) {
    %c0_i32 = arith.constant 0 : i32
    %c0_i32_0 = arith.constant 0 : i32
    %c0_i32_1 = arith.constant 0 : i32
    return %c0_i32, %c0_i32_0 : i32, i32
  }
  func.func @transform_7(%arg0: i32, %arg1: i32) -> (i32, i32) {
    %c0_i32 = arith.constant 0 : i32
    %c0_i32_0 = arith.constant 0 : i32
    %c0_i32_1 = arith.constant 0 : i32
    return %c0_i32, %c0_i32_0 : i32, i32
  }
  func.func @transform_8(%arg0: i32, %arg1: i32) -> (i32, i32) {
    %c0_i32 = arith.constant 0 : i32
    %c0_i32_0 = arith.constant 0 : i32
    %c0_i32_1 = arith.constant 0 : i32
    return %c0_i32, %c0_i32_0 : i32, i32
  }
  func.func @transform_9(%arg0: i32, %arg1: i32) -> (i32, i32) {
    %c0_i32 = arith.constant 0 : i32
    %c0_i32_0 = arith.constant 0 : i32
    %c0_i32_1 = arith.constant 0 : i32
    return %c0_i32, %c0_i32_0 : i32, i32
  }
  func.func @transform_10(%arg0: i32, %arg1: i32) -> (i32, i32, i32) {
    %c0_i32 = arith.constant 0 : i32
    %c0_i32_0 = arith.constant 0 : i32
    return %arg0, %arg1, %c0_i32 : i32, i32, i32
  }
}

module attributes {stable_mosaic.version = 11 : i64} {
  func.func @self_attention_kernel(%arg0: i32, %arg1: i32, %arg2: memref<1x16x32xbf16, #tpu.memory_space<vmem>>, %arg3: memref<1x8x32xbf16, #tpu.memory_space<vmem>>, %arg4: memref<32x32xbf16, #tpu.memory_space<vmem>>, %arg5: memref<1x32xf32, #tpu.memory_space<vmem>>, %arg6: memref<32x32xbf16, #tpu.memory_space<vmem>>, %arg7: memref<1x32xf32, #tpu.memory_space<vmem>>, %arg8: memref<32x32xbf16, #tpu.memory_space<vmem>>, %arg9: memref<1x32xf32, #tpu.memory_space<vmem>>, %arg10: memref<32x32xbf16, #tpu.memory_space<vmem>>, %arg11: memref<1x32xf32, #tpu.memory_space<vmem>>, %arg12: memref<1x8x32xf32, #tpu.memory_space<vmem>>, %arg13: memref<4x16x8xbf16, #tpu.memory_space<vmem>>, %arg14: memref<4x16x8xbf16, #tpu.memory_space<vmem>>, %arg15: memref<4x8x8xbf16, #tpu.memory_space<vmem>>, %arg16: memref<4x8x8xbf16, #tpu.memory_space<vmem>>) attributes {dimension_semantics = [#tpu.dimension_semantics<parallel>, #tpu.dimension_semantics<arbitrary>], iteration_bounds = array<i64: 2, 2>, scalar_prefetch = 0 : i64, scratch_operands = 4 : i64, tpu.core_type = #tpu.core_type<tc>, window_params = [{transform_indices = @transform_0, window_bounds = array<i64: 1, 16, 32>}, {transform_indices = @transform_1, window_bounds = array<i64: 1, 8, 32>}, {pipeline_mode = #tpu.pipeline_mode<synchronous>, transform_indices = @transform_2, window_bounds = array<i64: 32, 32>}, {pipeline_mode = #tpu.pipeline_mode<synchronous>, transform_indices = @transform_3, window_bounds = array<i64: 1, 32>}, {pipeline_mode = #tpu.pipeline_mode<synchronous>, transform_indices = @transform_4, window_bounds = array<i64: 32, 32>}, {pipeline_mode = #tpu.pipeline_mode<synchronous>, transform_indices = @transform_5, window_bounds = array<i64: 1, 32>}, {pipeline_mode = #tpu.pipeline_mode<synchronous>, transform_indices = @transform_6, window_bounds = array<i64: 32, 32>}, {pipeline_mode = #tpu.pipeline_mode<synchronous>, transform_indices = @transform_7, window_bounds = array<i64: 1, 32>}, {pipeline_mode = #tpu.pipeline_mode<synchronous>, transform_indices = @transform_8, window_bounds = array<i64: 32, 32>}, {pipeline_mode = #tpu.pipeline_mode<synchronous>, transform_indices = @transform_9, window_bounds = array<i64: 1, 32>}, {transform_indices = @transform_10, window_bounds = array<i64: 1, 8, 32>}]} {
    %c0_i32 = arith.constant 0 : i32
    %0 = arith.cmpi eq, %arg1, %c0_i32 : i32
    %1 = arith.extui %0 : i1 to i32
    %c0_i32_0 = arith.constant 0 : i32
    %2 = arith.cmpi ne, %1, %c0_i32_0 : i32
    scf.if %2 {
      %c0_23 = arith.constant 0 : index
      %c0_24 = arith.constant 0 : index
      %c0_25 = arith.constant 0 : index
      %26 = vector.load %arg2[%c0_23, %c0_24, %c0_25] : memref<1x16x32xbf16, #tpu.memory_space<vmem>>, vector<1x16x32xbf16>
      %27 = vector.shape_cast %26 : vector<1x16x32xbf16> to vector<16x32xbf16>
      %c0_26 = arith.constant 0 : index
      %c0_27 = arith.constant 0 : index
      %28 = vector.load %arg6[%c0_26, %c0_27] : memref<32x32xbf16, #tpu.memory_space<vmem>>, vector<32x32xbf16>
      %cst_28 = arith.constant dense<0.000000e+00> : vector<16x32xf32>
      %29 = tpu.matmul %27, %28, %cst_28 {dimension_numbers = #tpu.dot_dimension_numbers<[1], [0], [0], [1], [0, 0, 1, 1], [], []>} : vector<16x32xbf16>, vector<32x32xbf16>, vector<16x32xf32> -> vector<16x32xf32>
      %c0_29 = arith.constant 0 : index
      %c0_30 = arith.constant 0 : index
      %30 = vector.load %arg7[%c0_29, %c0_30] : memref<1x32xf32, #tpu.memory_space<vmem>>, vector<1x32xf32>
      %31 = vector.broadcast %30 : vector<1x32xf32> to vector<16x32xf32>
      %32 = arith.addf %29, %31 : vector<16x32xf32>
      %c0_31 = arith.constant 0 : index
      %c0_32 = arith.constant 0 : index
      %33 = vector.load %arg8[%c0_31, %c0_32] : memref<32x32xbf16, #tpu.memory_space<vmem>>, vector<32x32xbf16>
      %cst_33 = arith.constant dense<0.000000e+00> : vector<16x32xf32>
      %34 = tpu.matmul %27, %33, %cst_33 {dimension_numbers = #tpu.dot_dimension_numbers<[1], [0], [0], [1], [0, 0, 1, 1], [], []>} : vector<16x32xbf16>, vector<32x32xbf16>, vector<16x32xf32> -> vector<16x32xf32>
      %c0_34 = arith.constant 0 : index
      %c0_35 = arith.constant 0 : index
      %35 = vector.load %arg9[%c0_34, %c0_35] : memref<1x32xf32, #tpu.memory_space<vmem>>, vector<1x32xf32>
      %36 = vector.broadcast %35 : vector<1x32xf32> to vector<16x32xf32>
      %37 = arith.addf %34, %36 : vector<16x32xf32>
      %38 = vector.shape_cast %32 : vector<16x32xf32> to vector<16x4x8xf32>
      %39 = tpu.transpose %38, [1, 0, 2] : vector<16x4x8xf32> -> vector<4x16x8xf32>
      %40 = arith.truncf %39 : vector<4x16x8xf32> to vector<4x16x8xbf16>
      %c0_36 = arith.constant 0 : index
      %c0_37 = arith.constant 0 : index
      %c0_38 = arith.constant 0 : index
      %41 = vector.load %arg13[%c0_36, %c0_37, %c0_38] : memref<4x16x8xbf16, #tpu.memory_space<vmem>>, vector<4x16x8xbf16>
      tpu.vector_store %arg13[%c0_36, %c0_37, %c0_38], %40 {strides = array<i32>} : memref<4x16x8xbf16, #tpu.memory_space<vmem>>, vector<4x16x8xbf16>,
      %42 = vector.shape_cast %37 : vector<16x32xf32> to vector<16x4x8xf32>
      %43 = tpu.transpose %42, [1, 0, 2] : vector<16x4x8xf32> -> vector<4x16x8xf32>
      %44 = arith.truncf %43 : vector<4x16x8xf32> to vector<4x16x8xbf16>
      %c0_39 = arith.constant 0 : index
      %c0_40 = arith.constant 0 : index
      %c0_41 = arith.constant 0 : index
      %45 = vector.load %arg14[%c0_39, %c0_40, %c0_41] : memref<4x16x8xbf16, #tpu.memory_space<vmem>>, vector<4x16x8xbf16>
      tpu.vector_store %arg14[%c0_39, %c0_40, %c0_41], %44 {strides = array<i32>} : memref<4x16x8xbf16, #tpu.memory_space<vmem>>, vector<4x16x8xbf16>,
    } else {
    }
    %c0 = arith.constant 0 : index
    %c0_1 = arith.constant 0 : index
    %c0_2 = arith.constant 0 : index
    %3 = vector.load %arg3[%c0, %c0_1, %c0_2] : memref<1x8x32xbf16, #tpu.memory_space<vmem>>, vector<1x8x32xbf16>
    %4 = vector.shape_cast %3 : vector<1x8x32xbf16> to vector<8x32xbf16>
    %c0_3 = arith.constant 0 : index
    %c0_4 = arith.constant 0 : index
    %5 = vector.load %arg4[%c0_3, %c0_4] : memref<32x32xbf16, #tpu.memory_space<vmem>>, vector<32x32xbf16>
    %cst = arith.constant dense<0.000000e+00> : vector<8x32xf32>
    %6 = tpu.matmul %4, %5, %cst {dimension_numbers = #tpu.dot_dimension_numbers<[1], [0], [0], [1], [0, 0, 1, 1], [], []>} : vector<8x32xbf16>, vector<32x32xbf16>, vector<8x32xf32> -> vector<8x32xf32>
    %c0_5 = arith.constant 0 : index
    %c0_6 = arith.constant 0 : index
    %7 = vector.load %arg5[%c0_5, %c0_6] : memref<1x32xf32, #tpu.memory_space<vmem>>, vector<1x32xf32>
    %8 = vector.broadcast %7 : vector<1x32xf32> to vector<8x32xf32>
    %9 = arith.addf %6, %8 : vector<8x32xf32>
    %10 = vector.shape_cast %9 : vector<8x32xf32> to vector<8x4x8xf32>
    %11 = tpu.transpose %10, [1, 0, 2] : vector<8x4x8xf32> -> vector<4x8x8xf32>
    %12 = arith.truncf %11 : vector<4x8x8xf32> to vector<4x8x8xbf16>
    %c0_7 = arith.constant 0 : index
    %c0_8 = arith.constant 0 : index
    %c0_9 = arith.constant 0 : index
    %13 = vector.load %arg15[%c0_7, %c0_8, %c0_9] : memref<4x8x8xbf16, #tpu.memory_space<vmem>>, vector<4x8x8xbf16>
    tpu.vector_store %arg15[%c0_7, %c0_8, %c0_9], %12 {strides = array<i32>} : memref<4x8x8xbf16, #tpu.memory_space<vmem>>, vector<4x8x8xbf16>,
    %c0_i32_10 = arith.constant 0 : i32
    %c4_i32 = arith.constant 4 : i32
    %14 = arith.addi %c0_i32_10, %c4_i32 : i32
    %c1_i32 = arith.constant 1 : i32
    scf.for %arg17 = %c0_i32_10 to %14 step %c1_i32  : i32 {
      %c1_i32_23 = arith.constant 1 : i32
      %26 = arith.muli %arg17, %c1_i32_23 : i32
      %c0_i32_24 = arith.constant 0 : i32
      %27 = arith.addi %c0_i32_24, %26 : i32
      %28 = arith.index_cast %27 : i32 to index
      %c0_25 = arith.constant 0 : index
      %c0_26 = arith.constant 0 : index
      %29 = vector.load %arg15[%28, %c0_25, %c0_26] : memref<4x8x8xbf16, #tpu.memory_space<vmem>>, vector<1x8x8xbf16>
      %30 = vector.shape_cast %29 : vector<1x8x8xbf16> to vector<8x8xbf16>
      %31 = arith.index_cast %27 : i32 to index
      %c0_27 = arith.constant 0 : index
      %c0_28 = arith.constant 0 : index
      %32 = vector.load %arg13[%31, %c0_27, %c0_28] : memref<4x16x8xbf16, #tpu.memory_space<vmem>>, vector<1x16x8xbf16>
      %33 = vector.shape_cast %32 : vector<1x16x8xbf16> to vector<16x8xbf16>
      %34 = arith.index_cast %27 : i32 to index
      %c0_29 = arith.constant 0 : index
      %c0_30 = arith.constant 0 : index
      %35 = vector.load %arg14[%34, %c0_29, %c0_30] : memref<4x16x8xbf16, #tpu.memory_space<vmem>>, vector<1x16x8xbf16>
      %36 = vector.shape_cast %35 : vector<1x16x8xbf16> to vector<16x8xbf16>
      %cst_31 = arith.constant dense<0.000000e+00> : vector<8x16xf32>
      %37 = tpu.matmul %30, %33, %cst_31 {dimension_numbers = #tpu.dot_dimension_numbers<[1], [1], [0], [0], [0, 0, 1, 0], [], []>} : vector<8x8xbf16>, vector<16x8xbf16>, vector<8x16xf32> -> vector<8x16xf32>
      %cst_32 = arith.constant dense<0xFF800000> : vector<8xf32>
      %38 = vector.multi_reduction <maximumf>, %37, %cst_32 [1] : vector<8x16xf32> to vector<8xf32>
      %39 = vector.shape_cast %38 : vector<8xf32> to vector<8x1xf32>
      %40 = vector.broadcast %39 : vector<8x1xf32> to vector<8x16xf32>
      %41 = arith.subf %37, %40 : vector<8x16xf32>
      %42 = math.exp %41 : vector<8x16xf32>
      %cst_33 = arith.constant dense<0.000000e+00> : vector<8xf32>
      %43 = vector.multi_reduction <add>, %42, %cst_33 [1] : vector<8x16xf32> to vector<8xf32>
      %44 = vector.shape_cast %43 : vector<8xf32> to vector<8x1xf32>
      %45 = arith.truncf %42 : vector<8x16xf32> to vector<8x16xbf16>
      %cst_34 = arith.constant dense<0.000000e+00> : vector<8x8xf32>
      %46 = tpu.matmul %45, %36, %cst_34 {dimension_numbers = #tpu.dot_dimension_numbers<[1], [0], [0], [1], [0, 0, 1, 1], [], []>} : vector<8x16xbf16>, vector<16x8xbf16>, vector<8x8xf32> -> vector<8x8xf32>
      %47 = tpu.reciprocal %44 {approx = true} : vector<8x1xf32> -> vector<8x1xf32>
      %48 = vector.broadcast %47 : vector<8x1xf32> to vector<8x8xf32>
      %49 = arith.mulf %46, %48 : vector<8x8xf32>
      %50 = arith.truncf %49 : vector<8x8xf32> to vector<8x8xbf16>
      %51 = arith.index_cast %27 : i32 to index
      %c0_35 = arith.constant 0 : index
      %c0_36 = arith.constant 0 : index
      %52 = vector.load %arg16[%51, %c0_35, %c0_36] : memref<4x8x8xbf16, #tpu.memory_space<vmem>>, vector<1x8x8xbf16>
      %53 = vector.shape_cast %52 : vector<1x8x8xbf16> to vector<8x8xbf16>
      %54 = vector.shape_cast %50 : vector<8x8xbf16> to vector<1x8x8xbf16>
      tpu.vector_store %arg16[%51, %c0_35, %c0_36], %54 {strides = array<i32>} : memref<4x8x8xbf16, #tpu.memory_space<vmem>>, vector<1x8x8xbf16>,
    }
    %c4_i32_11 = arith.constant 4 : i32
    %c0_12 = arith.constant 0 : index
    %c0_13 = arith.constant 0 : index
    %c0_14 = arith.constant 0 : index
    %15 = vector.load %arg16[%c0_12, %c0_13, %c0_14] : memref<4x8x8xbf16, #tpu.memory_space<vmem>>, vector<4x8x8xbf16>
    %16 = tpu.transpose %15, [1, 0, 2] : vector<4x8x8xbf16> -> vector<8x4x8xbf16>
    %17 = vector.shape_cast %16 : vector<8x4x8xbf16> to vector<8x32xbf16>
    %c0_15 = arith.constant 0 : index
    %c0_16 = arith.constant 0 : index
    %18 = vector.load %arg10[%c0_15, %c0_16] : memref<32x32xbf16, #tpu.memory_space<vmem>>, vector<32x32xbf16>
    %cst_17 = arith.constant dense<0.000000e+00> : vector<8x32xf32>
    %19 = tpu.matmul %17, %18, %cst_17 {dimension_numbers = #tpu.dot_dimension_numbers<[1], [0], [0], [1], [0, 0, 1, 1], [], []>} : vector<8x32xbf16>, vector<32x32xbf16>, vector<8x32xf32> -> vector<8x32xf32>
    %c0_18 = arith.constant 0 : index
    %c0_19 = arith.constant 0 : index
    %20 = vector.load %arg11[%c0_18, %c0_19] : memref<1x32xf32, #tpu.memory_space<vmem>>, vector<1x32xf32>
    %21 = vector.broadcast %20 : vector<1x32xf32> to vector<8x32xf32>
    %22 = arith.addf %19, %21 : vector<8x32xf32>
    %c0_20 = arith.constant 0 : index
    %c0_21 = arith.constant 0 : index
    %c0_22 = arith.constant 0 : index
    %23 = vector.load %arg12[%c0_20, %c0_21, %c0_22] : memref<1x8x32xf32, #tpu.memory_space<vmem>>, vector<1x8x32xf32>
    %24 = vector.shape_cast %23 : vector<1x8x32xf32> to vector<8x32xf32>
    %25 = vector.shape_cast %22 : vector<8x32xf32> to vector<1x8x32xf32>
    tpu.vector_store %arg12[%c0_20, %c0_21, %c0_22], %25 {strides = array<i32>} : memref<1x8x32xf32, #tpu.memory_space<vmem>>, vector<1x8x32xf32>,
    return
  }
  func.func @transform_0(%arg0: i32, %arg1: i32) -> (i32, i32, i32) {
    %c0_i32 = arith.constant 0 : i32
    %c0_i32_0 = arith.constant 0 : i32
    %c0_i32_1 = arith.constant 0 : i32
    return %arg0, %c0_i32, %c0_i32_0 : i32, i32, i32
  }
  func.func @transform_1(%arg0: i32, %arg1: i32) -> (i32, i32, i32) {
    %c0_i32 = arith.constant 0 : i32
    %c0_i32_0 = arith.constant 0 : i32
    return %arg0, %arg1, %c0_i32 : i32, i32, i32
  }
  func.func @transform_2(%arg0: i32, %arg1: i32) -> (i32, i32) {
    %c0_i32 = arith.constant 0 : i32
    %c0_i32_0 = arith.constant 0 : i32
    %c0_i32_1 = arith.constant 0 : i32
    return %c0_i32, %c0_i32_0 : i32, i32
  }
  func.func @transform_3(%arg0: i32, %arg1: i32) -> (i32, i32) {
    %c0_i32 = arith.constant 0 : i32
    %c0_i32_0 = arith.constant 0 : i32
    %c0_i32_1 = arith.constant 0 : i32
    return %c0_i32, %c0_i32_0 : i32, i32
  }
  func.func @transform_4(%arg0: i32, %arg1: i32) -> (i32, i32) {
    %c0_i32 = arith.constant 0 : i32
    %c0_i32_0 = arith.constant 0 : i32
    %c0_i32_1 = arith.constant 0 : i32
    return %c0_i32, %c0_i32_0 : i32, i32
  }
  func.func @transform_5(%arg0: i32, %arg1: i32) -> (i32, i32) {
    %c0_i32 = arith.constant 0 : i32
    %c0_i32_0 = arith.constant 0 : i32
    %c0_i32_1 = arith.constant 0 : i32
    return %c0_i32, %c0_i32_0 : i32, i32
  }
  func.func @transform_6(%arg0: i32, %arg1: i32) -> (i32, i32) {
    %c0_i32 = arith.constant 0 : i32
    %c0_i32_0 = arith.constant 0 : i32
    %c0_i32_1 = arith.constant 0 : i32
    return %c0_i32, %c0_i32_0 : i32, i32
  }
  func.func @transform_7(%arg0: i32, %arg1: i32) -> (i32, i32) {
    %c0_i32 = arith.constant 0 : i32
    %c0_i32_0 = arith.constant 0 : i32
    %c0_i32_1 = arith.constant 0 : i32
    return %c0_i32, %c0_i32_0 : i32, i32
  }
  func.func @transform_8(%arg0: i32, %arg1: i32) -> (i32, i32) {
    %c0_i32 = arith.constant 0 : i32
    %c0_i32_0 = arith.constant 0 : i32
    %c0_i32_1 = arith.constant 0 : i32
    return %c0_i32, %c0_i32_0 : i32, i32
  }
  func.func @transform_9(%arg0: i32, %arg1: i32) -> (i32, i32) {
    %c0_i32 = arith.constant 0 : i32
    %c0_i32_0 = arith.constant 0 : i32
    %c0_i32_1 = arith.constant 0 : i32
    return %c0_i32, %c0_i32_0 : i32, i32
  }
  func.func @transform_10(%arg0: i32, %arg1: i32) -> (i32, i32, i32) {
    %c0_i32 = arith.constant 0 : i32
    %c0_i32_0 = arith.constant 0 : i32
    return %arg0, %arg1, %c0_i32 : i32, i32, i32
  }
}

</mosaic_0001>

<bundles_post_ra>
// kernel: tpu_custom_call.1
= control target key start
LH: loop header
LB: loop body
LE: loop exit
PB: predicated region body
PF: predicated region fallthrough
CT: control target
= control target key end

     0   :  { %s3345_s0 = inlined_call_operand.hbm [shape: bf16[2,16,32], index: 0, kind: input, shape index: {}]   ;;  %s3346_s1 = inlined_call_operand.hbm [shape: bf16[2,16,32], index: 1, kind: input, shape index: {}]   ;;  %s3347_s2 = inlined_call_operand.hbm [shape: bf16[32,32], index: 2, kind: input, shape index: {}]   ;;  %s3348_s3 = inlined_call_operand.vmem [shape: f32[1,32], index: 3, kind: input, shape index: {}]   ;;  %s3349_s4 = inlined_call_operand.hbm [shape: bf16[32,32], index: 4, kind: input, shape index: {}]   ;;  %s3350_s5 = inlined_call_operand.vmem [shape: f32[1,32], index: 5, kind: input, shape index: {}]   ;;  %s3351_s6 = inlined_call_operand.hbm [shape: bf16[32,32], index: 6, kind: input, shape index: {}]   ;;  %s3352_s7 = inlined_call_operand.vmem [shape: f32[1,32], index: 7, kind: input, shape index: {}]   ;;  %s3353_s8 = inlined_call_operand.hbm [shape: bf16[32,32], index: 8, kind: input, shape index: {}]   ;;  %s3354_s9 = inlined_call_operand.vmem [shape: f32[1,32], index: 9, kind: input, shape index: {}]   ;;  %s3355_s10 = inlined_call_operand.hbm [shape: f32[2,16,32], index: 10, kind: output, shape index: {}]  }
   0x1   :  { %3367 = sst [smem:[#allocation31_spill]] %s3345_s0 }
   0x2   :  { %3368 = sst [smem:[#allocation32_spill]] %s3347_s2 }
   0x3   :  { %3369 = sst [smem:[#allocation33_spill]] %s3348_s3 }
   0x4   :  { %3370 = sst [smem:[#allocation34_spill]] %s3349_s4 }
   0x5   :  { %3371 = sst [smem:[#allocation35_spill]] %s3350_s5 }
   0x6   :  { %3372 = sst [smem:[#allocation36_spill]] %s3351_s6 }
   0x7   :  { %3373 = sst [smem:[#allocation37_spill]] %s3352_s7 }
   0x8   :  { %3374 = sst [smem:[#allocation38_spill]] %s3353_s8 }
   0x9   :  { %3375 = sst [smem:[#allocation39_spill]] %s3354_s9 }
   0xa   :  { %3376 = sst [smem:[#allocation40_spill]] %s3355_s10 }
   0xb   :  { %15 = vsyncpa [#allocation7], 0 }
   0xc   :  { %17 = vsyncpa [#allocation7 + $0x1], 0 }
   0xd   :  { %18 = vsyncpa [#allocation10], 0 }
   0xe   :  { %20 = vsyncpa [#allocation10 + $0x1], 0 }
   0xf   :  { %21 = vsyncpa [#allocation13], 0 }
  0x10   :  { %22 = vsyncpa [#allocation16], 0 }
  0x11   :  { %23 = vsyncpa [#allocation8], 0 }
  0x12   :  { %25 = vsyncpa [#allocation8 + $0x1], 0  ;;  %s2815_s13 = smov 0   ;;  %s2817_s14 = smov 0  }
  0x13   :  { %s2819_s15 = smov 0   ;;  %s2821_s16 = smov 0  }
  0x14   :  { %s2823_s17 = smov 0   ;;  %s2825_s18 = smov 0  }
  0x15   :  { %s2827_s19 = smov 0   ;;  %s2829_s20 = smov 0  }
  0x16   :  { %s2831_s21 = smov 0   ;;  %s2833_s22 = smov 0  }
  0x17   :  { %s2835_s23 = smov 0  }
  0x18 LB: > { %3377 = sst [smem:[#allocation24_spill]] %s2685_s13  ;;  %s2871_s24 = sadd.s32 4294967295, %s2725_s23   ;;  %s2725_s23 = sphi %s2835_s23, %s31_s23   ;;  %s2721_s22 = sphi %s2833_s22, %s3432_s22   ;;  %s2717_s21 = sphi %s2831_s21, %s3431_s21   ;;  %s2713_s20 = sphi %s2829_s20, %s3430_s20   ;;  %s2709_s19 = sphi %s2827_s19, %s3429_s19   ;;  %s2705_s18 = sphi %s2825_s18, %s3428_s18   ;;  %s2701_s17 = sphi %s2823_s17, %s3427_s17   ;;  %s2697_s16 = sphi %s2821_s16, %s3426_s16   ;;  %s2693_s15 = sphi %s2819_s15, %s3425_s15   ;;  %s2689_s14 = sphi %s2817_s14, %s3424_s14   ;;  %s2685_s13 = sphi %s2815_s13, %s3423_s13  }
  0x19   : > { %3378 = sst [smem:[#allocation25_spill]] %s2709_s19  ;;  %p2070_p0 = scmp.ge.s32.totalorder %s2725_s23, 1 }
  0x1a   : > { %3379 = sst [smem:[#allocation26_spill]] %s2713_s20  ;;  %p3359_p1 = scmp.eq.s32.totalorder %s2871_s24, 0 }
  0x1b   : > { %p298_p2 = scmp.lt.s32.totalorder %s2725_s23, 5  ;;  %s2731_s26 = smov [#allocation11]  }
  0x1c   : > { %s310_s27 = sshll.u32 %s2731_s26, 4  ;;  %s2732_s29 = smov [#allocation12]   ;;  %s311_s27 = int_to_ptr.vmem [resolvable:$true] %s310_s27 }
  0x1d   : > { %p2876_p3 = pnand %p2070_p0, %p298_p2  ;;  %s326_s30 = sshll.u32 %s2732_s29, 4  ;;  %s327_s30 = int_to_ptr.vmem [resolvable:$true] %s326_s30 }
  0x1e   : > { %s2733_s11 = smov [#allocation14]   ;;  %s2436_s10 = scalar_lea.vmem %s311_s27, 256 }
  0x1f   : > { %p2254_p4 = pneg %p2876_p3  ;;  %s342_s12 = sshll.u32 %s2733_s11, 4  ;;  %s343_s12 = int_to_ptr.vmem [resolvable:$true] %s342_s12 }
  0x20   : > { %p2437_p7 = scmp.ne.s32.totalorder %s311_s27, %s2436_s10  ;;  %p2444_p10 = scmp.lt.s32.totalorder %s311_s27, %s311_s27 }
  0x21   : > { %p2884_p5 = pnand %p2254_p4, %p3359_p1  ;;  %p2445_p11 = scmp.lt.s32.totalorder %s2436_s10, %s2436_s10 }
  0x23   : > { %p2427_p6 = pneg %p2884_p5  ;;  %p2446_p12 = por %p2445_p11, %p2444_p10 }
  0x25   : > { %p2439_p8 = pnand %p2437_p7, %p2427_p6 }
  0x27   : > { %p2440_p9 = pneg %p2439_p8 }
  0x29   : > { %p2447_p13 = pnand %p2446_p12, %p2440_p9 }
  0x2b   : > { %2450 = shalt.err (!%p2447_p13)
}
  0x2c   : > { %s3357_s26 = smov 64   ;;  %s3358_s29 = smov 4  }
  0x2d   : > { %s3382_s2 = sld [smem:[#allocation32_spill]]  ;;  %s2462_s20 = scalar_lea.vmem %s327_s30, 256 }
  0x2e   : > { %p2463_p0 = scmp.ne.s32.totalorder %s327_s30, %s2462_s20  ;;  %p2470_p7 = scmp.lt.s32.totalorder %s327_s30, %s327_s30 }
  0x2f   : > { %p2471_p8 = scmp.lt.s32.totalorder %s2462_s20, %s2462_s20 }
  0x30   : > { %p2465_p2 = pnand %p2463_p0, %p2427_p6 }
  0x31   : > { %p2472_p9 = por %p2471_p8, %p2470_p7 }
  0x32   : > { %p2466_p4 = pneg %p2465_p2 }
  0x33   : > { %2257 = dma.hbm_to_vmem [thread:$0]  (!%p2884_p5), %s3382_s2, 256, %s311_s27, [#allocation10], %s3357_s26, %s3357_s26, %s3358_s29  }
  0x34   : > { %p2473_p10 = pnand %p2472_p9, %p2466_p4 }
  0x36   : > { %2476 = shalt.err (!%p2473_p10)
}
  0x37   : > { %s3383_s4 = sld [smem:[#allocation34_spill]]  ;;  %s2488_s9 = scalar_lea.vmem %s343_s12, 256 }
  0x38   : > { %p2489_p11 = scmp.ne.s32.totalorder %s343_s12, %s2488_s9  ;;  %p2496_p0 = scmp.lt.s32.totalorder %s343_s12, %s343_s12 }
  0x39   : > { %p2497_p2 = scmp.lt.s32.totalorder %s2488_s9, %s2488_s9 }
  0x3a   : > { %p2491_p12 = pnand %p2489_p11, %p2427_p6 }
  0x3b   : > { %p2498_p4 = por %p2497_p2, %p2496_p0 }
  0x3c   : > { %p2492_p13 = pneg %p2491_p12 }
  0x3d   : > { %2260 = dma.hbm_to_vmem [thread:$0]  (!%p2884_p5), %s3383_s4, 256, %s327_s30, [#allocation13], %s3357_s26, %s3357_s26, %s3358_s29  }
  0x3e   : > { %p2499_p7 = pnand %p2498_p4, %p2492_p13 }
  0x40   : > { %2502 = shalt.err (!%p2499_p7)
}
  0x41   : > { %s3384_s6 = sld [smem:[#allocation36_spill]]  ;;  %s2736_s27 = smov [#allocation15]  }
  0x42   : > { %s358_s30 = sshll.u32 %s2736_s27, 4  ;;  %s359_s30 = int_to_ptr.vmem [resolvable:$true] %s358_s30 }
  0x43   : > { %s2514_s11 = scalar_lea.vmem %s359_s30, 256  ;;  %p2522_p11 = scmp.lt.s32.totalorder %s359_s30, %s359_s30 }
  0x44   : > { %p2515_p8 = scmp.ne.s32.totalorder %s359_s30, %s2514_s11  ;;  %p2523_p12 = scmp.lt.s32.totalorder %s2514_s11, %s2514_s11 }
  0x46   : > { %p2517_p9 = pnand %p2515_p8, %p2427_p6  ;;  %p2524_p13 = por %p2523_p12, %p2522_p11 }
  0x47   : > { %2263 = dma.hbm_to_vmem [thread:$0]  (!%p2884_p5), %s3384_s6, 256, %s343_s12, [#allocation13], %s3357_s26, %s3357_s26, %s3358_s29  }
  0x48   : > { %p2518_p10 = pneg %p2517_p9 }
  0x4a   : > { %p2525_p0 = pnand %p2524_p13, %p2518_p10 }
  0x4c   : > { %2528 = shalt.err (!%p2525_p0)
}
  0x4d   : > { %s3385_s8 = sld [smem:[#allocation38_spill]]  ;;  %p57_p6 = scmp.ne.s32.totalorder %s2705_s18, %s2701_s17 }
  0x4e   : > { %p58_p2 = scmp.eq.s32.totalorder %s2725_s23, 0  ;;  %p63_p4 = scmp.ne.s32.totalorder %s2701_s17, %s2697_s16 }
  0x4f   : > { %p2282_p7 = scmp.lt.s32.totalorder %s2725_s23, 4  ;;  %s375_s9 = sand.u32 1, %s2705_s18  }
  0x50   : > { %p59_p8 = por %p58_p2, %p57_p6  ;;  %p2946_p9 = por %p3359_p1, %p63_p4 }
  0x51   : > { %s2076_s20 = sshll.u32 %s375_s9, 3  ;;  %s2153_s27 = sshll.u32 %s2721_s22, 7 }
  0x52   : > { %s3387_s0 = sld [smem:[#allocation31_spill]]  ;;  %s2737_s2 = smov [#allocation6]  }
  0x53   : > { %2266 = dma.hbm_to_vmem [thread:$0]  (!%p2884_p5), %s3385_s8, 256, %s359_s30, [#allocation16], %s3357_s26, %s3357_s26, %s3358_s29  }
  0x54   : > { %s379_s30 = scalar_lea.vmem [#allocation6], %s2076_s20  ;;  %p2956_p5 = pnand %p2282_p7, %p59_p8 }
  0x55   : > { %s386_s28 = sshll.u32 %s379_s30, 4  ;;  %s376_s26 = scalar_lea.sflag [#allocation7], %s375_s9  ;;  %s387_s28 = int_to_ptr.vmem [resolvable:$true] %s386_s28 }
  0x56   : > { %p2531_p10 = pneg %p2956_p5  ;;  %s2542_s29 = scalar_lea.vmem %s387_s28, 128 }
  0x57   : > { %p2543_p11 = scmp.ne.s32.totalorder %s387_s28, %s2542_s29  ;;  %s2547_s4 = sshll.u32 %s2737_s2, 4  ;;  %s2548_s4 = int_to_ptr.vmem [resolvable:$false] %s2547_s4 }
  0x58   : > { %s385_s10 = scalar_lea.hbm %s3387_s0, %s2153_s27  ;;  %s2549_s27 = scalar_lea.vmem %s2548_s4, 256 }
  0x59   : > { %p2545_p12 = pnand %p2543_p11, %p2531_p10  ;;  %p2550_p0 = scmp.lt.s32.totalorder %s387_s28, %s2548_s4 }
  0x5a   : > { %p2551_p6 = scmp.lt.s32.totalorder %s2549_s27, %s2542_s29 }
  0x5b   : > { %p2546_p13 = pneg %p2545_p12 }
  0x5c   : > { %p2552_p4 = por %p2551_p6, %p2550_p0 }
  0x5e   : > { %p2553_p1 = pnand %p2552_p4, %p2546_p13 }
  0x60   : > { %2556 = shalt.err (!%p2553_p1)
}
  0x61   : > { %s3389_s20 = smov 4   ;;  %s3390_s11 = smov 64  }
  0x62   : > { %2270 = dma.hbm_to_vmem [thread:$0]  (!%p2956_p5), %s385_s10, 128, %s387_s28, %s376_s26, %s3390_s11, %s3390_s11, %s3389_s20  }
  0x63   : > { %s2069_s2 = sadd.s32 4294967294, %s2725_s23   ;;  %s40_s4 = sadd.s32 1, %s2717_s21 }
  0x64   : > { %s43_s29 = sadd.s32 1, %s2721_s22  ;;  %p41_p1 = scmp.ge.s32.totalorder %s40_s4, 2 }
  0x65   : > { %s78_s9 = sadd.s32 1, %s2693_s15  ;;  %p85_p8 = scmp.ne.s32.totalorder %s2693_s15, %s2689_s14 }
  0x66   : > { %p91_p10 = scmp.ne.s32.totalorder %s2689_s14, %s2685_s13  ;;  %s3434_s4 = smov (%p41_p1, %s40_s4), 0 }
  0x67   : > { %3391 = sst [smem:[#allocation27_spill]] %s3434_s4  ;;  %s3436_s29 = smov (!%p41_p1, %s43_s29), %s2721_s22 }
  0x68   : > { %s74_s12 = ssub.s32 %s2717_s21, %s3434_s4  ;;  %p2982_p5 = por %p85_p8, %p58_p2 }
  0x69   : > { %p45_p11 = scmp.ge.s32.totalorder %s3436_s29, 2  ;;  %p3393_p12 = scmp.eq.s32.totalorder %s2871_s24, 0 }
  0x6a   : > { %p285_p0 = scmp.eq.s32.totalorder %s2871_s24, 3  ;;  %p291_p6 = scmp.eq.s32.totalorder %s2069_s2, 3 }
  0x6b   : > { %p2988_p13 = por %p91_p10, %p3393_p12  ;;  %s3438_s29 = smov (%p45_p11, %s3436_s29), 0 }
  0x6c   : > { %3395 = sst [smem:[#allocation28_spill]] %s3438_s29  ;;  %p2995_p4 = por %p285_p0, %p85_p8 }
  0x6d   : > { %p2999_p2 = por %p291_p6, %p91_p10  ;;  %s47_s16 = ssub.s32 %s2721_s22, %s3438_s29 }
  0x6e   : > { %s3396_s10 = scalar_select %p2995_p4, 1, 0 }
  0x6f   : > { %s3398_s30 = scalar_select %p2999_p2, 1, 0 }
  0x70   : > { %3397 = sst [smem:[#allocation29_spill]] %s3396_s10  ;;  %s396_s27 = sand.u32 1, %s2725_s23  }
  0x71   : > { %3399 = sst [smem:[#allocation30_spill]] %s3398_s30  ;;  %p48_p1 = scmp.eq.s32.totalorder %s47_s16, 0 }
  0x72   : > { %s75_s20 = sor.u32 %s74_s12, %s47_s16  ;;  %s3400_s11 = sadd.s32 1, %s2705_s18 }
  0x73   : > { %p76_p12 = scmp.eq.s32.totalorder %s75_s20, 0  ;;  %s398_s6 = sand.u32 1, %s2693_s15  }
  0x74   : > { %s3009_s2 = scalar_select %p48_p1, %s2705_s18, %s3400_s11  }
  0x75   : > { %s3012_s0 = scalar_select %p76_p12, %s2693_s15, %s78_s9  }
  0x76   : > { %s2080_s8 = sshll.u32 %s2721_s22, 1  ;;  %s2079_s4 = sshll.u32 %s398_s6, 2 }
  0x77   : > { %s405_s13 = sadd.s32 %s2717_s21, %s2080_s8  ;;  %s400_s30 = scalar_lea.vmem [#allocation9], %s2079_s4 }
  0x78   : > { %s2081_s10 = sshll.u32 %s405_s13, 6  ;;  %s409_s19 = sshll.u32 %s400_s30, 4  ;;  %s410_s19 = int_to_ptr.vmem [resolvable:$true] %s409_s19 }
  0x79   : > { %s407_s29 = scalar_lea.hbm %s3346_s1, %s2081_s10  ;;  %p3024_p8 = pnand %p2282_p7, %p2982_p5 }
  0x7a   : > { %s397_s9 = scalar_lea.sflag [#allocation10], %s396_s27  ;;  %s2570_s6 = scalar_lea.vmem %s410_s19, 64 }
  0x7b   : > { %p2559_p10 = pneg %p3024_p8  ;;  %p2571_p11 = scmp.ne.s32.totalorder %s410_s19, %s2570_s6 }
  0x7c   : > { %s2738_s8 = smov [#allocation9]  }
  0x7d   : > { %p2573_p0 = pnand %p2571_p11, %p2559_p10  ;;  %s2575_s5 = sshll.u32 %s2738_s8, 4  ;;  %s2576_s5 = int_to_ptr.vmem [resolvable:$false] %s2575_s5 }
  0x7e   : > { %s2577_s7 = scalar_lea.vmem %s2576_s5, 128  ;;  %p2578_p1 = scmp.lt.s32.totalorder %s410_s19, %s2576_s5 }
  0x7f   : > { %p2574_p6 = pneg %p2573_p0  ;;  %p2579_p12 = scmp.lt.s32.totalorder %s2577_s7, %s2570_s6 }
  0x81   : > { %p2580_p2 = por %p2579_p12, %p2578_p1 }
  0x83   : > { %p2581_p4 = pnand %p2580_p2, %p2574_p6 }
  0x85   : > { %2584 = shalt.err (!%p2581_p4)
}
  0x86   : > { %2273 = dma.hbm_to_vmem [thread:$0]  (!%p3024_p8), %s407_s29, 64, %s410_s19, %s397_s9  }
  0x87   : > { %418 = sbr.rel (%p2876_p3) target bundleno = 1811 (0x713), region = 60  ;;  %s420_s13 = sand.u32 (!%p2876_p3), 1, %s2701_s17  }
  0x88   : > { %s3035_s4 = sshll.u32 (!%p2876_p3), %s420_s13, 3  ;;  %s421_s26 = scalar_lea.sflag (!%p2876_p3), [#allocation7], %s420_s13 }
  0x89   : > { %s424_s10 = scalar_lea.vmem (!%p2876_p3), [#allocation6], %s3035_s4 }
  0x8c   : > { %2660 = dma.done.wait (%p2946_p9), %s421_s26, 128  }
  0x8d   : > { %2662 = vsyncadd (%p2946_p9), %s421_s26, 4294967168  ;;  %s429_s19 = sand.u32 1, %s2871_s24   ;;  %s3044_s29 = sand.u32 1, %s2689_s14  }
  0x8e   : > { %s2084_s25 = sshll.u32 %s3044_s29, 2  ;;  %s430_s30 = scalar_lea.sflag [#allocation10], %s429_s19 }
  0x8f   : > { %s3047_s16 = scalar_lea.vmem [#allocation9], %s2084_s25 }
  0x90   : > { %2664 = dma.done.wait (%p2988_p13), %s430_s30, 64  }
  0x91   : > { %2666 = vsyncadd (%p2988_p13), %s430_s30, 4294967232  ;;  %p3402_p3 = scmp.eq.s32.totalorder %s2871_s24, 0 }
  0x93   : > { %2668 = dma.done.wait (%p3402_p3), [#allocation10], 256   ;;  %p3403_p7 = pmov %p3402_p3 }
  0x94   : > { %p3404_p9 = pmov %p3402_p3 }
  0x95   : > { %2670 = vsyncadd (%p3403_p7), [#allocation10], 4294967040 }
  0x96   : > { %2672 = dma.done.wait (%p3404_p9), [#allocation13], 512   ;;  %p3405_p5 = pmov %p3402_p3 }
  0x97   : > { %p3406_p4 = pmov %p3402_p3 }
  0x98   : > { %2674 = vsyncadd (%p3405_p5), [#allocation13], 4294966784 }
  0x99   : > { %2676 = dma.done.wait (%p3406_p4), [#allocation16], 256   ;;  %p3407_p2 = pmov %p3402_p3 }
  0x9a   : > { %s2089_s3 = sshll.u32 %s3044_s29, 3  ;;  %s3408_s27 = sld [smem:[#allocation25_spill]] }
  0x9b   : > { %2678 = vsyncadd (%p3407_p2), [#allocation16], 4294967040  ;;  %s3066_s28 = scalar_lea.vmem [#allocation17], %s2089_s3 }
  0xa0   : > { %p2090_p13 = scmp.ne.s32.totalorder %s3408_s27, 0 }
  0xa1   : > { %s3409_s11 = sld [smem:[#allocation35_spill]] (!%p2090_p13)  ;;  %s2741_s12 = smov (!%p2090_p13), 112  }
  0xa2   : > { %495 = sbr.rel (%p2090_p13) target bundleno = 543 (0x21f), region = 88  ;;  %s2742_s9 = smov (!%p2090_p13), 120  }
  0xa3   : > { %s3410_s5 = sld [smem:[#allocation37_spill]] (!%p2090_p13)  ;;  %s2743_s7 = smov (!%p2090_p13), 104  }
  0xa7   : > { %v2410_v0 = vld [vmem:[#allocation12 + $0x8] sm:$0xff]   ;;  %v2739_v1 = vmov 0.0   ;;  %v2411_v2 = vld [vmem:[#allocation14 + $0x8] sm:$0xff]   ;;  %v2412_v3 = vld [vmem:[#allocation12] sm:$0xff]   ;;  %vm2740_vm0 = vmmov 0   ;;  %vm526_vm1 = vcmask 261120   ;;  %v660_v22 = vlaneseq }
  0xa8   : > { %2188 = vmatprep.subr.bf16.mxu0 %v2739_v1  ;;  %2196 = vmatprep.subr.bf16.mxu1 %v2739_v1  ;;  %v2413_v4 = vld [vmem:[#allocation14] sm:$0xff]   ;;  %v2414_v5 = vld [vmem:[%s424_s10] sm:$0xff]   ;;  %v2744_v20 = vmov 1983009808   ;;  %v2745_v23 = vmov 1934713408  }
  0xa9   : > { %2189 = vmatpush3.bf16.msra.mxu0 %v2410_v0  ;;  %2192 = vmatprep.mubr.msk.bf16.mxu0 %vm2740_vm0, %v2739_v1  ;;  %v2091_v6 = vld [vmem:[%s3409_s11] ss:$0 sm:$0xff]  ;;  %v658_v21 = vunpack.c.l.s4 %v2744_v20  ;;  %v690_v24 = vunpack.c.l.s4 %v2745_v23  ;;  %v661_v26 = vshrl.u32 %v660_v22, 7  ;;  %vm959_vm2 = vcmask 60416  }
  0xaa   : > { %2197 = vmatpush3.bf16.msra.mxu1 %v2411_v2  ;;  %2190 = vmatprep.subr.bf16.mxu0 %v2739_v1  ;;  %v2096_v12 = vld [vmem:[%s3410_s5] ss:$0 sm:$0xff] }
  0xab   : > { %2198 = vmatprep.subr.bf16.mxu1 %v2739_v1  ;;  %2200 = vmatprep.mubr.msk.bf16.mxu1 %vm2740_vm0, %v2739_v1  ;;  %v659_v25 = vunpack.c.0.s8 %v658_v21  ;;  %v691_v29 = vunpack.c.0.s8 %v690_v24 }
  0xad   : > { %2191 = vmatpush3.bf16.msra.mxu0 %v2412_v3  ;;  %v3092_v30 = vsub.s32 %v659_v25, %v661_v26  ;;  %v3094_v37 = vsub.s32 %v691_v29, %v661_v26 }
  0xae   : > { %2199 = vmatpush3.bf16.msra.mxu1 %v2413_v4 }
  0xb0   : > { %2193 = vmatmul.mubr.msk.bf16.vlgmr.msra.gmra.mxu0 %vm526_vm1, %v2414_v5 }
  0xb1   : > { %2201 = vmatmul.mubr.msk.bf16.vlgmr.msra.gmra.mxu1 %vm526_vm1, %v2414_v5 }
 0x170   : > { %v564_v7 = vpop.f32.mrf.mxu0 }
 0x171   : > { %v565_v8 = vadd.f32 %v2091_v6, %v564_v7  ;;  %v628_v9 = vpop.f32.mrf.mxu1 }
 0x172   : > { %v2194_v10 = vpop.f32.mrf.mxu0  ;;  %v3079_v17 = vadd.f32 %v2096_v12, %v628_v9 }
 0x173   : > { %643 = vrot.lane.b32.xlu1 %v565_v8, %s2741_s12  ;;  %637 = vrot.lane.b32.xlu0 %v565_v8, %s2742_s9  ;;  %v2202_v11 = vpop.f32.mrf.mxu1 }
 0x174   : > { %v567_v13 = vpop.f32.mrf.mxu0 }
 0x175   : > { %v3077_v14 = vadd.f32 %v2091_v6, %v567_v13  ;;  %v631_v15 = vpop.f32.mrf.mxu1 }
 0x176   : > { %v2195_v16 = vpop.f32.mrf.mxu0  ;;  %v3084_v19 = vadd.f32 %v2096_v12, %v631_v15 }
 0x177   : > { %649 = vrot.lane.b32.xlu0 %v565_v8, %s2743_s7  ;;  %645 = vrot.lane.b32.xlu1 %v3077_v14, %s2741_s12  ;;  %v2203_v18 = vpop.f32.mrf.mxu1 }
 0x17b   : > { %970 = vrot.lane.b32.xlu0 %v3079_v17, %s2742_s9  ;;  %651 = vrot.lane.b32.xlu1 %v3077_v14, %s2743_s7 }
 0x17f   : > { %976 = vrot.lane.b32.xlu0 %v3079_v17, %s2741_s12  ;;  %972 = vrot.lane.b32.xlu1 %v3084_v19, %s2742_s9 }
 0x183   : > { %978 = vrot.lane.b32.xlu1 %v3084_v19, %s2741_s12  ;;  %639 = vrot.lane.b32.xlu0 %v3077_v14, %s2742_s9 }
 0x187   : > { %984 = vrot.lane.b32.xlu1 %v3084_v19, %s2743_s7  ;;  %982 = vrot.lane.b32.xlu0 %v3079_v17, %s2743_s7 }
 0x1e5   : > { %v644_v27 = vpop.permute.xlu1 %643  ;;  %v638_v28 = vpop.permute.xlu0 %637 }
 0x1e6   : > { %v655_v31 = vcombine.low %v565_v8, %v644_v27  ;;  %v656_v32 = vcombine.high %v565_v8, %v644_v27 }
 0x1e8   : > { %v663_v38 = vrot.slane %v655_v31, %v3092_v30  ;;  %v670_v39 = vrot.slane %v656_v32, %v3092_v30 }
 0x1e9   : > { %v650_v33 = vpop.permute.xlu0 %649  ;;  %v646_v34 = vpop.permute.xlu1 %645 }
 0x1ea   : > { %v671_v35 = vcombine.low %v638_v28, %v650_v33  ;;  %v672_v36 = vcombine.high %v638_v28, %v650_v33  ;;  %v723_v52 = vcombine.low %v3077_v14, %v646_v34  ;;  %v724_v53 = vcombine.high %v3077_v14, %v646_v34 }
 0x1ec   : > { %v679_v40 = vrot.slane %v671_v35, %v3092_v30  ;;  %v686_v41 = vrot.slane %v672_v36, %v3092_v30  ;;  %v731_v2 = vrot.slane %v723_v52, %v3092_v30  ;;  %v738_v3 = vrot.slane %v724_v53, %v3092_v30 }
 0x1ed   : > { %v3100_v42 = vpop.permute.xlu0 %970  ;;  %v652_v43 = vpop.permute.xlu1 %651 }
 0x1ee   : > { %v687_v44 = vcombine.low %v663_v38, %v679_v40  ;;  %v688_v45 = vcombine.high %v663_v38, %v679_v40  ;;  %v703_v46 = vcombine.low %v670_v39, %v686_v41  ;;  %v704_v47 = vcombine.high %v670_v39, %v686_v41 }
 0x1f0   : > { %v695_v48 = vrot.slane %v687_v44, %v3094_v37  ;;  %v702_v49 = vrot.slane %v688_v45, %v3094_v37  ;;  %v711_v50 = vrot.slane %v703_v46, %v3094_v37  ;;  %v718_v51 = vrot.slane %v704_v47, %v3094_v37 }
 0x1f1   : > { %v977_v54 = vpop.permute.xlu0 %976  ;;  %v3108_v55 = vpop.permute.xlu1 %972 }
 0x1f2   : > { %v791_v56 = vcombine.low %v695_v48, %v702_v49  ;;  %v2100_v57 = vcombine.high %v695_v48, %v702_v49  ;;  %v807_v58 = vcombine.low %v711_v50, %v718_v51  ;;  %v2101_v59 = vcombine.high %v711_v50, %v718_v51 }
 0x1f3   : > { %v988_v60 = vcombine.low %v3079_v17, %v977_v54  ;;  %v989_v61 = vcombine.high %v3079_v17, %v977_v54 }
 0x1f4   : > { %v798_v62 = vrot.slane %v791_v56, %v3092_v30  ;;  %v806_v63 = vrot.slane %v2100_v57, %v3092_v30  ;;  %v814_v0 = vrot.slane %v807_v58, %v3092_v30  ;;  %v822_v1 = vrot.slane %v2101_v59, %v3092_v30 }
 0x1f5   : > { %v3119_v4 = vrot.slane %v988_v60, %v3092_v30  ;;  %v3122_v5 = vrot.slane %v989_v61, %v3092_v30  ;;  %v979_v6 = vpop.permute.xlu1 %978  ;;  %v640_v7 = vpop.permute.xlu0 %639 }
 0x1f6   : > { %v823_v8 = vcombine.low %v798_v62, %v806_v63  ;;  %v824_v9 = vcombine.high %v798_v62, %v806_v63  ;;  %v839_v10 = vcombine.low %v814_v0, %v822_v1  ;;  %v840_v11 = vcombine.high %v814_v0, %v822_v1 }
 0x1f7   : > { %v1056_v12 = vcombine.low %v3084_v19, %v979_v6  ;;  %v1057_v13 = vcombine.high %v3084_v19, %v979_v6  ;;  %v739_v14 = vcombine.low %v640_v7, %v652_v43  ;;  %v740_v15 = vcombine.high %v640_v7, %v652_v43 }
 0x1f8   : > { %v831_v16 = vrot.slane %v823_v8, %v3094_v37  ;;  %v838_v17 = vrot.slane %v824_v9, %v3094_v37  ;;  %v847_v18 = vrot.slane %v839_v10, %v3094_v37  ;;  %v854_v20 = vrot.slane %v840_v11, %v3094_v37 }
 0x1f9   : > { %v1064_v21 = vrot.slane %v1056_v12, %v3092_v30  ;;  %v1071_v22 = vrot.slane %v1057_v13, %v3092_v30  ;;  %v747_v23 = vrot.slane %v739_v14, %v3092_v30  ;;  %v754_v24 = vrot.slane %v740_v15, %v3092_v30  ;;  %v985_v33 = vpop.permute.xlu1 %984  ;;  %v983_v34 = vpop.permute.xlu0 %982 }
 0x1fa   : > { %v855_v25 = vcombine.low %v831_v16, %v847_v18  ;;  %v856_v19 = vcombine.high %v831_v16, %v847_v18  ;;  %v857_v26 = vcombine.low %v838_v17, %v854_v20  ;;  %v858_v27 = vcombine.high %v838_v17, %v854_v20 }
 0x1fb   : > { %v755_v28 = vcombine.low %v731_v2, %v747_v23  ;;  %v756_v29 = vcombine.high %v731_v2, %v747_v23  ;;  %v771_v31 = vcombine.low %v738_v3, %v754_v24  ;;  %v772_v32 = vcombine.high %v738_v3, %v754_v24 }
 0x1fc   : > { %v2154_v35 = vpack.c.bf16 %v855_v25, %v855_v25  ;;  %v2156_v36 = vpack.c.bf16 %v856_v19, %v856_v19  ;;  %v2158_v38 = vpack.c.bf16 %v857_v26, %v857_v26  ;;  %v2160_v39 = vpack.c.bf16 %v858_v27, %v858_v27 }
 0x1fd   : > { %v763_v40 = vrot.slane %v755_v28, %v3094_v37  ;;  %v770_v41 = vrot.slane %v756_v29, %v3094_v37  ;;  %v779_v43 = vrot.slane %v771_v31, %v3094_v37  ;;  %v786_v44 = vrot.slane %v772_v32, %v3094_v37 }
 0x1fe   : > { %960 = vst.msk [vmem:[#allocation2] sm:$0xf] %vm959_vm2, %v2154_v35  ;;  %962 = vst.msk [vmem:[#allocation2 + $0x8] sm:$0xf] %vm959_vm2, %v2156_v36  ;;  %v1072_v45 = vcombine.low %v3108_v55, %v985_v33  ;;  %v1073_v46 = vcombine.high %v3108_v55, %v985_v33  ;;  %v1004_v47 = vcombine.low %v3100_v42, %v983_v34 }
 0x1ff   : > { %964 = vst.msk [vmem:[#allocation2 + $0x10] sm:$0xf] %vm959_vm2, %v2158_v38  ;;  %966 = vst.msk [vmem:[#allocation2 + $0x18] sm:$0xf] %vm959_vm2, %v2160_v39  ;;  %v1005_v48 = vcombine.high %v3100_v42, %v983_v34  ;;  %v859_v49 = vcombine.low %v763_v40, %v770_v41  ;;  %v2102_v50 = vcombine.high %v763_v40, %v770_v41 }
 0x200   : > { %v875_v51 = vcombine.low %v779_v43, %v786_v44  ;;  %v2103_v52 = vcombine.high %v779_v43, %v786_v44  ;;  %v1080_v53 = vrot.slane %v1072_v45, %v3092_v30  ;;  %v1087_v54 = vrot.slane %v1073_v46, %v3092_v30 }
 0x201   : > { %v1012_v56 = vrot.slane %v1004_v47, %v3092_v30  ;;  %v1019_v57 = vrot.slane %v1005_v48, %v3092_v30  ;;  %v866_v58 = vrot.slane %v859_v49, %v3092_v30  ;;  %v874_v55 = vrot.slane %v2102_v50, %v3092_v30 }
 0x202   : > { %v882_v59 = vrot.slane %v875_v51, %v3092_v30  ;;  %v890_v42 = vrot.slane %v2103_v52, %v3092_v30  ;;  %v1088_v60 = vcombine.low %v1064_v21, %v1080_v53  ;;  %v1089_v61 = vcombine.high %v1064_v21, %v1080_v53 }
 0x203   : > { %v1104_v62 = vcombine.low %v1071_v22, %v1087_v54  ;;  %v1105_v63 = vcombine.high %v1071_v22, %v1087_v54  ;;  %v891_v0 = vcombine.low %v866_v58, %v874_v55  ;;  %v892_v1 = vcombine.high %v866_v58, %v874_v55 }
 0x204   : > { %v907_v2 = vcombine.low %v882_v59, %v890_v42  ;;  %v908_v3 = vcombine.high %v882_v59, %v890_v42  ;;  %v1096_v6 = vrot.slane %v1088_v60, %v3094_v37  ;;  %v1103_v7 = vrot.slane %v1089_v61, %v3094_v37 }
 0x205   : > { %v1112_v8 = vrot.slane %v1104_v62, %v3094_v37  ;;  %v1119_v9 = vrot.slane %v1105_v63, %v3094_v37  ;;  %v899_v10 = vrot.slane %v891_v0, %v3094_v37  ;;  %v906_v11 = vrot.slane %v892_v1, %v3094_v37 }
 0x206   : > { %v915_v12 = vrot.slane %v907_v2, %v3094_v37  ;;  %v922_v13 = vrot.slane %v908_v3, %v3094_v37  ;;  %v1192_v14 = vcombine.low %v1096_v6, %v1103_v7  ;;  %v2114_v15 = vcombine.high %v1096_v6, %v1103_v7 }
 0x207   : > { %v1208_v16 = vcombine.low %v1112_v8, %v1119_v9  ;;  %v2115_v17 = vcombine.high %v1112_v8, %v1119_v9  ;;  %v1020_v35 = vcombine.low %v3119_v4, %v1012_v56  ;;  %v1021_v36 = vcombine.high %v3119_v4, %v1012_v56 }
 0x208   : > { %v923_v18 = vcombine.low %v899_v10, %v915_v12  ;;  %v924_v20 = vcombine.high %v899_v10, %v915_v12  ;;  %v925_v21 = vcombine.low %v906_v11, %v922_v13  ;;  %v926_v22 = vcombine.high %v906_v11, %v922_v13 }
 0x209   : > { %v1199_v23 = vrot.slane %v1192_v14, %v3092_v30  ;;  %v1207_v24 = vrot.slane %v2114_v15, %v3092_v30  ;;  %v1215_v25 = vrot.slane %v1208_v16, %v3092_v30  ;;  %v1223_v19 = vrot.slane %v2115_v17, %v3092_v30 }
 0x20a   : > { %v2155_v26 = vpack.c.bf16 %v923_v18, %v923_v18  ;;  %v2157_v27 = vpack.c.bf16 %v924_v20, %v924_v20  ;;  %v2159_v28 = vpack.c.bf16 %v925_v21, %v925_v21  ;;  %v2161_v29 = vpack.c.bf16 %v926_v22, %v926_v22 }
 0x20b   : > { %v1224_v31 = vcombine.low %v1199_v23, %v1207_v24  ;;  %v1225_v32 = vcombine.high %v1199_v23, %v1207_v24  ;;  %v1240_v33 = vcombine.low %v1215_v25, %v1223_v19  ;;  %v1241_v34 = vcombine.high %v1215_v25, %v1223_v19 }
 0x20c   : > { %961 = vst.msk [vmem:[#allocation2 + $0x4] sm:$0xf] %vm959_vm2, %v2155_v26  ;;  %963 = vst.msk [vmem:[#allocation2 + $0xc] sm:$0xf] %vm959_vm2, %v2157_v27  ;;  %v1036_v38 = vcombine.low %v3122_v5, %v1019_v57  ;;  %v1037_v39 = vcombine.high %v3122_v5, %v1019_v57  ;;  %v1028_v45 = vrot.slane %v1020_v35, %v3094_v37 }
 0x20d   : > { %965 = vst.msk [vmem:[#allocation2 + $0x14] sm:$0xf] %vm959_vm2, %v2159_v28  ;;  %967 = vst.msk [vmem:[#allocation2 + $0x1c] sm:$0xf] %vm959_vm2, %v2161_v29  ;;  %v1232_v40 = vrot.slane %v1224_v31, %v3094_v37  ;;  %v1239_v41 = vrot.slane %v1225_v32, %v3094_v37  ;;  %v1248_v43 = vrot.slane %v1240_v33, %v3094_v37 }
 0x20e   : > { %v1255_v44 = vrot.slane %v1241_v34, %v3094_v37  ;;  %v1035_v46 = vrot.slane %v1021_v36, %v3094_v37  ;;  %v1044_v47 = vrot.slane %v1036_v38, %v3094_v37  ;;  %v1051_v4 = vrot.slane %v1037_v39, %v3094_v37 }
 0x20f   : > { %v1256_v48 = vcombine.low %v1232_v40, %v1248_v43  ;;  %v1257_v49 = vcombine.high %v1232_v40, %v1248_v43 }
 0x210   : > { %v1258_v50 = vcombine.low %v1239_v41, %v1255_v44  ;;  %v1259_v5 = vcombine.high %v1239_v41, %v1255_v44  ;;  %v1124_v51 = vcombine.low %v1028_v45, %v1035_v46  ;;  %v2112_v52 = vcombine.high %v1028_v45, %v1035_v46 }
 0x211   : > { %v1140_v53 = vcombine.low %v1044_v47, %v1051_v4  ;;  %v2113_v54 = vcombine.high %v1044_v47, %v1051_v4  ;;  %v2163_v56 = vpack.c.bf16 %v1256_v48, %v1256_v48  ;;  %v2165_v57 = vpack.c.bf16 %v1257_v49, %v1257_v49 }
 0x212   : > { %v2167_v58 = vpack.c.bf16 %v1258_v50, %v1258_v50  ;;  %v2169_v55 = vpack.c.bf16 %v1259_v5, %v1259_v5  ;;  %v1131_v59 = vrot.slane %v1124_v51, %v3092_v30  ;;  %v1139_v42 = vrot.slane %v2112_v52, %v3092_v30 }
 0x213   : > { %v1147_v60 = vrot.slane %v1140_v53, %v3092_v30  ;;  %v1155_v61 = vrot.slane %v2113_v54, %v3092_v30  ;;  %1293 = vst.msk [vmem:[#allocation3 + $0x4] sm:$0xf] %vm959_vm2, %v2163_v56  ;;  %1295 = vst.msk [vmem:[#allocation3 + $0xc] sm:$0xf] %vm959_vm2, %v2165_v57 }
 0x214   : > { %1297 = vst.msk [vmem:[#allocation3 + $0x14] sm:$0xf] %vm959_vm2, %v2167_v58  ;;  %1299 = vst.msk [vmem:[#allocation3 + $0x1c] sm:$0xf] %vm959_vm2, %v2169_v55  ;;  %v1156_v62 = vcombine.low %v1131_v59, %v1139_v42  ;;  %v1157_v63 = vcombine.high %v1131_v59, %v1139_v42 }
 0x215   : > { %v1172_v0 = vcombine.low %v1147_v60, %v1155_v61  ;;  %v1173_v1 = vcombine.high %v1147_v60, %v1155_v61 }
 0x216   : > { %v1164_v2 = vrot.slane %v1156_v62, %v3094_v37  ;;  %v1171_v3 = vrot.slane %v1157_v63, %v3094_v37 }
 0x217   : > { %v1180_v6 = vrot.slane %v1172_v0, %v3094_v37  ;;  %v1187_v30 = vrot.slane %v1173_v1, %v3094_v37 }
 0x219   : > { %v1188_v7 = vcombine.low %v1164_v2, %v1180_v6  ;;  %v1189_v8 = vcombine.high %v1164_v2, %v1180_v6  ;;  %v1190_v9 = vcombine.low %v1171_v3, %v1187_v30  ;;  %v1191_v10 = vcombine.high %v1171_v3, %v1187_v30 }
 0x21b   : > { %v2162_v11 = vpack.c.bf16 %v1188_v7, %v1188_v7  ;;  %v2164_v12 = vpack.c.bf16 %v1189_v8, %v1189_v8  ;;  %v2166_v13 = vpack.c.bf16 %v1190_v9, %v1190_v9  ;;  %v2168_v14 = vpack.c.bf16 %v1191_v10, %v1191_v10 }
 0x21d   : > { %1292 = vst.msk [vmem:[#allocation3] sm:$0xf] %vm959_vm2, %v2162_v11  ;;  %1294 = vst.msk [vmem:[#allocation3 + $0x8] sm:$0xf] %vm959_vm2, %v2164_v12 }
 0x21e   : > { %1296 = vst.msk [vmem:[#allocation3 + $0x10] sm:$0xf] %vm959_vm2, %v2166_v13  ;;  %1298 = vst.msk [vmem:[#allocation3 + $0x18] sm:$0xf] %vm959_vm2, %v2168_v14 }
 0x21f PF: > { %v2415_v15 = vld [vmem:[#allocation11 + $0x8] sm:$0xff]   ;;  %v2746_v37 = vmov 0.0   ;;  %v2416_v16 = vld [vmem:[#allocation11] sm:$0xff]   ;;  %vm2747_vm3 = vmmov 0   ;;  %v1300_v17 = vld [vmem:[%s3047_s16] sm:$0xf]  ;;  %v1383_v26 = vlaneseq }
 0x220   : > { %2204 = vmatprep.subr.bf16.mxu0 %v2746_v37  ;;  %2208 = vmatprep.mubr.msk.bf16.mxu0 %vm2747_vm3, %v2746_v37  ;;  %vm1324_vm4 = vcmask 261120   ;;  %s3411_s26 = sld [smem:[#allocation33_spill]]  ;;  %s2748_s10 = smov 104   ;;  %v2751_v25 = vmov 1983009808   ;;  %vm1518_vm5 = vcmask 60416  }
 0x221   : > { %2205 = vmatpush3.bf16.msra.mxu0 %v2415_v15  ;;  %s2749_s19 = smov 120   ;;  %s2750_s25 = smov 112   ;;  %v1381_v19 = vunpack.c.l.s4 %v2751_v25  ;;  %v2752_v27 = vmov 1934713408   ;;  %v1384_v31 = vshrl.u32 %v1383_v26, 7 }
 0x222   : > { %2206 = vmatprep.subr.bf16.mxu0 %v2746_v37  ;;  %v1413_v28 = vunpack.c.l.s4 %v2752_v27  ;;  %s3231_s30 = smov 0  }
 0x223   : > { %v1382_v29 = vunpack.c.0.s8 %v1381_v19 }
 0x224   : > { %v1414_v34 = vunpack.c.0.s8 %v1413_v28 }
 0x225   : > { %2207 = vmatpush3.bf16.msra.mxu0 %v2416_v16  ;;  %v3207_v35 = vsub.s32 %v1382_v29, %v1384_v31 }
 0x226   : > { %v2124_v18 = vld [vmem:[%s3411_s26] ss:$0 sm:$0xff]  ;;  %v3209_v43 = vsub.s32 %v1414_v34, %v1384_v31 }
 0x228   : > { %2209 = vmatmul.mubr.msk.bf16.vlgmr.msra.gmra.mxu0 %vm1324_vm4, %v1300_v17 }
 0x2e8   : > { %v1362_v20 = vpop.f32.mrf.mxu0 }
 0x2e9   : > { %v1363_v21 = vadd.f32 %v2124_v18, %v1362_v20 }
 0x2ea   : > { %v2210_v22 = vpop.f32.mrf.mxu0 }
 0x2eb   : > { %1375 = vrot.lane.b32.xlu1 %v1363_v21, %s2748_s10  ;;  %1369 = vrot.lane.b32.xlu0 %v1363_v21, %s2749_s19 }
 0x2ec   : > { %v1365_v23 = vpop.f32.mrf.mxu0 }
 0x2ee   : > { %v2211_v24 = vpop.f32.mrf.mxu0 }
 0x2ef   : > { %1372 = vrot.lane.b32.xlu0 %v1363_v21, %s2750_s25 }
 0x35d   : > { %v1376_v32 = vpop.permute.xlu1 %1375  ;;  %v1370_v33 = vpop.permute.xlu0 %1369 }
 0x35e   : > { %v1394_v36 = vcombine.low %v1370_v33, %v1376_v32  ;;  %v1395_v38 = vcombine.high %v1370_v33, %v1376_v32 }
 0x360   : > { %v1402_v44 = vrot.slane %v1394_v36, %v3207_v35  ;;  %v1409_v45 = vrot.slane %v1395_v38, %v3207_v35 }
 0x361   : > { %v1373_v39 = vpop.permute.xlu0 %1372 }
 0x362   : > { %v1378_v40 = vcombine.low %v1363_v21, %v1373_v39  ;;  %v1379_v41 = vcombine.high %v1363_v21, %v1373_v39 }
 0x364   : > { %v1386_v46 = vrot.slane %v1378_v40, %v3207_v35  ;;  %v1393_v47 = vrot.slane %v1379_v41, %v3207_v35 }
 0x366   : > { %v1410_v4 = vcombine.low %v1386_v46, %v1402_v44  ;;  %v1411_v48 = vcombine.high %v1386_v46, %v1402_v44  ;;  %v1426_v49 = vcombine.low %v1393_v47, %v1409_v45  ;;  %v1427_v50 = vcombine.high %v1393_v47, %v1409_v45 }
 0x368   : > { %v1418_v5 = vrot.slane %v1410_v4, %v3209_v43  ;;  %v1425_v51 = vrot.slane %v1411_v48, %v3209_v43  ;;  %v1434_v52 = vrot.slane %v1426_v49, %v3209_v43  ;;  %v1441_v53 = vrot.slane %v1427_v50, %v3209_v43 }
 0x36a   : > { %v1446_v54 = vcombine.low %v1418_v5, %v1425_v51  ;;  %v2128_v56 = vcombine.high %v1418_v5, %v1425_v51  ;;  %v1462_v57 = vcombine.low %v1434_v52, %v1441_v53  ;;  %v2129_v58 = vcombine.high %v1434_v52, %v1441_v53 }
 0x36c   : > { %v1453_v55 = vrot.slane %v1446_v54, %v3207_v35  ;;  %v1461_v59 = vrot.slane %v2128_v56, %v3207_v35  ;;  %v1469_v42 = vrot.slane %v1462_v57, %v3207_v35  ;;  %v1477_v60 = vrot.slane %v2129_v58, %v3207_v35 }
 0x36e   : > { %v1478_v61 = vcombine.low %v1453_v55, %v1461_v59  ;;  %v1479_v62 = vcombine.high %v1453_v55, %v1461_v59  ;;  %v1494_v63 = vcombine.low %v1469_v42, %v1477_v60  ;;  %v1495_v0 = vcombine.high %v1469_v42, %v1477_v60 }
 0x370   : > { %v1486_v1 = vrot.slane %v1478_v61, %v3209_v43  ;;  %v1493_v2 = vrot.slane %v1479_v62, %v3209_v43  ;;  %v1502_v3 = vrot.slane %v1494_v63, %v3209_v43  ;;  %v1509_v6 = vrot.slane %v1495_v0, %v3209_v43 }
 0x372   : > { %v1510_v30 = vcombine.low %v1486_v1, %v1502_v3  ;;  %v1511_v7 = vcombine.high %v1486_v1, %v1502_v3  ;;  %v1512_v8 = vcombine.low %v1493_v2, %v1509_v6  ;;  %v1513_v9 = vcombine.high %v1493_v2, %v1509_v6 }
 0x374   : > { %v1514_v10 = vpack.c.bf16 %v1510_v30, %v1510_v30  ;;  %v1515_v11 = vpack.c.bf16 %v1511_v7, %v1511_v7  ;;  %v1516_v12 = vpack.c.bf16 %v1512_v8, %v1512_v8  ;;  %v1517_v13 = vpack.c.bf16 %v1513_v9, %v1513_v9 }
 0x376   : > { %1519 = vst.msk [vmem:[#allocation4] sm:$0xf] %vm1518_vm5, %v1514_v10  ;;  %1520 = vst.msk [vmem:[#allocation4 + $0x4] sm:$0xf] %vm1518_vm5, %v1515_v11 }
 0x377   : > { %1521 = vst.msk [vmem:[#allocation4 + $0x8] sm:$0xf] %vm1518_vm5, %v1516_v12  ;;  %1522 = vst.msk [vmem:[#allocation4 + $0xc] sm:$0xf] %vm1518_vm5, %v1517_v13 }
 0x378 LB: >> { %v2753_v14 = vmov 0.0   ;;  %vm2754_vm6 = vmmov 0   ;;  %s2170_s16 = sshll.u32 %s2729_s30, 3  ;;  %vm1546_vm7 = vcmask 64512   ;;  %s2130_s27 = sshll.u32 %s2729_s30, 2  ;;  %vm1593_vm8 = vcmask 130048   ;;  %s2729_s30 = sphi %s3231_s30, %s1528_s30  }
 0x379   : >> { %2212 = vmatprep.subr.bf16.mxu0 %v2753_v14  ;;  %2214 = vmatprep.mubr.msk.bf16.mxu0 %vm2754_vm6, %v2753_v14  ;;  %s1534_s3 = scalar_lea.vmem [#allocation2], %s2170_s16  ;;  %s1530_s24 = scalar_lea.vmem [#allocation4], %s2130_s27 }
 0x37a   : >> { %2218 = vmatprep.subr.bf16.mxu1 %v2753_v14  ;;  %2220 = vmatprep.mubr.msk.bf16.mxu1 %vm2754_vm6, %v2753_v14  ;;  %v2417_v15 = vld [vmem:[%s1534_s3] sm:$0xff]   ;;  %s1538_s20 = scalar_lea.vmem [#allocation3], %s2170_s16  ;;  %s1657_s11 = scalar_lea.vmem [#allocation5], %s2130_s27 }
 0x37b   : >> { %v1551_v16 = vsel %vm1546_vm7, %v2417_v15, 0  ;;  %v2418_v24 = vld [vmem:[%s1538_s20] sm:$0xff]   ;;  %s1528_s30 = sadd.s32 1, %s2729_s30  }
 0x37c   : >> { %2213 = vmatpush3.bf16.xpose.msra.mxu0 %v1551_v16  ;;  %2219 = vmatpush3.bf16.msra.mxu1 %v2418_v24  ;;  %p1525_p8 = scmp.ge.s32.totalorder %s1528_s30, 4  }
 0x37d   : > { %2224 = vmatprep.subr.bf16.mxu0 (%p1525_p8), %v2746_v37  ;;  %v2423_v53 = vld [vmem:[#allocation15 + $0x8] sm:$0xff] (%p1525_p8)   ;;  %v2424_v8 = vld [vmem:[#allocation15] sm:$0xff] (%p1525_p8)   ;;  %v2755_v15 = vmov (%p1525_p8), 0   ;;  %s2756_s12 = smov (%p1525_p8), 8   ;;  %s3412_s9 = sld [smem:[#allocation26_spill]] (%p1525_p8)  ;;  %vm1824_vm9 = vcmask (%p1525_p8), 195584  }
 0x37e   : >> { %v1531_v17 = vld [vmem:[%s1530_s24] sm:$0xf]  ;;  %s3413_s6 = sld [smem:[#allocation25_spill]] (%p1525_p8)  ;;  %s2757_s8 = smov (%p1525_p8), 24  }
 0x37f   : > { %s2758_s5 = smov (%p1525_p8), 16   ;;  %s3414_s7 = sld [smem:[#allocation29_spill]] (%p1525_p8) }
 0x380   : > { %s3415_s19 = sld [smem:[#allocation39_spill]] (%p1525_p8)  ;;  %s1909_s30 = sshll.u32 (%p1525_p8), %s3066_s28, 4  ;;  %s3283_s30 = int_to_ptr.vmem [resolvable:$true] %s1909_s30 }
 0x381   : > { %s3416_s27 = sld [smem:[#allocation40_spill]] (%p1525_p8)  ;;  %s1894_s20 = scalar_lea.sflag (%p1525_p8), [#allocation8], %s3044_s29 }
 0x383   : >> { %2215 = vmatmul.mubr.msk.bf16.vlgmr.msra.gmra.mxu0 %vm1546_vm7, %v1531_v17  ;;  %s2149_s13 = sshll.u32 (%p1525_p8), %s3412_s9, 1 }
 0x384   : > { %2228 = vmatprep.mubr.msk.bf16.mxu0 (%p1525_p8), %vm2747_vm3, %v2746_v37  ;;  %2225 = vmatpush3.bf16.msra.mxu0 (%p1525_p8), %v2423_v53  ;;  %s1905_s4 = sadd.s32 (%p1525_p8), %s3413_s6, %s2149_s13 }
 0x385   : > { %2226 = vmatprep.subr.bf16.mxu0 (%p1525_p8), %v2746_v37  ;;  %s2150_s25 = sshll.u32 (%p1525_p8), %s1905_s4, 7  ;;  %p3417_p11 = scmp.ne.s32.totalorder (%p1525_p8), %s3414_s7, 0 }
 0x387   : > { %s3281_s24 = scalar_lea.hbm (%p1525_p8), %s3416_s27, %s2150_s25 }
 0x388   : > { %2227 = vmatpush3.bf16.msra.mxu0 (%p1525_p8), %v2424_v8 }
 0x443   : >> { %v1587_v18 = vpop.f32.mrf.mxu0 }
 0x444   : >> { %v1594_v20 = vsel %vm1593_vm8, %v1587_v18, -inf }
 0x445   : >> { %1595 = vmax.xlane.f32.xlu0 %v1594_v20  ;;  %v2216_v21 = vpop.f32.mrf.mxu0 }
 0x447   : >> { %v1590_v22 = vpop.f32.mrf.mxu0 }
 0x449   : >> { %v2217_v23 = vpop.f32.mrf.mxu0 }
 0x4ce   : >> { %v1596_v25 = vpop.xlane.xlu0 %1595 }
 0x4cf   : >> { %v1597_v19 = vsub.f32 %v1587_v18, %v1596_v25 }
 0x4d1   : >> { %v1598_v26 = vmul.f32 1.442695, %v1597_v19 }
 0x4d3   : >> { %2419 = vpow2.f32 %v1598_v26 }
 0x4e0   : >> { %v2420_v27 = vpop.eup %2419 }
 0x4e1   : >> { %v1600_v28 = vsel %vm1593_vm8, %v2420_v27, 0.0  ;;  %v1603_v29 = vpack.c.bf16 %v2420_v27, %v2420_v27 }
 0x4e2   : >> { %1601 = vadd.xlane.f32.xlu0 %v1600_v28 }
 0x4e3   : >> { %2221 = vmatmul.mubr.msk.bf16.vlgmr.msra.gmra.mxu1 %vm1593_vm8, %v1603_v29 }
 0x56b   : >> { %v1602_v31 = vpop.xlane.xlu0 %1601 }
 0x56c   : >> { %2421 = vrcp.f32 %v1602_v31 }
 0x579   : >> { %v2422_v32 = vpop.eup %2421 }
 0x5a3   : >> { %v1647_v33 = vpop.f32.mrf.mxu1 }
 0x5a4   : >> { %v1654_v34 = vmul.f32 %v2422_v32, %v1647_v33  ;;  %v2144_v33 = vld [vmem:[%s3415_s19] ss:$0 sm:$0xff] (%p1525_p8) }
 0x5a5   : >> { %v2222_v36 = vpop.f32.mrf.mxu1  ;;  %1527 = sbr.rel (!%p1525_p8) target bundleno = 888 (0x378), region = 149 }
 0x5a6   : >> { %v1655_v38 = vpack.c.bf16 %v1654_v34, %v1654_v34 }
 0x5a7   : >> { %v1650_v39 = vpop.f32.mrf.mxu1 }
 0x5a8   : >> { %1658 = vst.msk [vmem:[%s1657_s11] sm:$0xf] %vm1518_vm5, %v1655_v38  ;;  %s2585_s11 = scalar_lea.vmem (%p1525_p8), %s3283_s30, 128 }
 0x5a9   : >> { %v2223_v40 = vpop.f32.mrf.mxu1  ;;  %p2586_p10 = scmp.ne.s32.totalorder (%p1525_p8), %s3283_s30, %s2585_s11 }
 0x5ab   : > { %p2587_p0 = pnand %p2586_p10, %p3417_p11 }
 0x5ad   : > { %p2588_p6 = pneg %p2587_p0 }
 0x5af   : > { %v1659_v41 = vld [vmem:[#allocation5] sm:$0xf]  ;;  %v1660_v44 = vld [vmem:[#allocation5 + $0x4] sm:$0xf]  ;;  %v1661_v45 = vld [vmem:[#allocation5 + $0x8] sm:$0xf] }
 0x5b0   : > { %v1662_v46 = vld [vmem:[#allocation5 + $0xc] sm:$0xf]  ;;  %v1665_v47 = vpack.i.b16 %v1660_v44, %v1659_v41  ;;  %v1666_v4 = vshrl.u32 %v1659_v41, 16  ;;  %v1667_v48 = vshrl.u32 %v1660_v44, 16  ;;  %v1672_v49 = vshrl.u32 %v1661_v45, 16 }
 0x5b1   : > { %v1671_v50 = vpack.i.b16 %v1662_v46, %v1661_v45  ;;  %v1673_v5 = vshrl.u32 %v1662_v46, 16 }
 0x5b2   : > { %v1668_v51 = vpack.i.b16 %v1667_v48, %v1666_v4  ;;  %v1682_v52 = vrot.slane %v1665_v47, %v3207_v35 }
 0x5b3   : > { %v1674_v54 = vpack.i.b16 %v1673_v5, %v1672_v49  ;;  %v1690_v56 = vrot.slane %v1671_v50, %v3207_v35 }
 0x5b4   : > { %v1716_v57 = vrot.slane %v1668_v51, %v3207_v35 }
 0x5b5   : > { %v1691_v58 = vcombine.low %v1682_v52, %v1690_v56  ;;  %v1692_v55 = vcombine.high %v1682_v52, %v1690_v56  ;;  %v1724_v59 = vrot.slane %v1674_v54, %v3207_v35 }
 0x5b7   : > { %v1699_v42 = vrot.slane %v1691_v58, %v3209_v43  ;;  %v1706_v60 = vrot.slane %v1692_v55, %v3209_v43  ;;  %v1725_v61 = vcombine.low %v1716_v57, %v1724_v59  ;;  %v1726_v62 = vcombine.high %v1716_v57, %v1724_v59 }
 0x5b9   : > { %v1733_v63 = vrot.slane %v1725_v61, %v3209_v43  ;;  %v1740_v0 = vrot.slane %v1726_v62, %v3209_v43  ;;  %v1743_v1 = vcombine.low %v1699_v42, %v1706_v60  ;;  %v2139_v2 = vcombine.high %v1699_v42, %v1706_v60 }
 0x5bb   : > { %v1750_v3 = vrot.slane %v1743_v1, %v3207_v35  ;;  %v1758_v6 = vrot.slane %v2139_v2, %v3207_v35  ;;  %v1768_v30 = vcombine.low %v1733_v63, %v1740_v0  ;;  %v2140_v7 = vcombine.high %v1733_v63, %v1740_v0 }
 0x5bd   : > { %v1759_v37 = vcombine.low %v1750_v3, %v1758_v6  ;;  %v1775_v9 = vrot.slane %v1768_v30, %v3207_v35  ;;  %v1783_v10 = vrot.slane %v2140_v7, %v3207_v35 }
 0x5bf   : > { %v1766_v11 = vrot.slane %v1759_v37, %v3209_v43  ;;  %v1784_v12 = vcombine.low %v1775_v9, %v1783_v10 }
 0x5c1   : > { %v1791_v13 = vrot.slane %v1784_v12, %v3209_v43  ;;  %v1796_v14 = vshrl.u32 %v1766_v11, 16  ;;  %v1767_v16 = vcombine.high %v1766_v11, %v2755_v15 }
 0x5c3   : > { %v1797_v17 = vshrl.u32 %v1791_v13, 16  ;;  %v1792_v18 = vcombine.high %v1791_v13, %v2755_v15  ;;  %v1802_v20 = vshrl.u32 %v1767_v16, 16  ;;  %v1795_v21 = vpack.i.b16 %v1791_v13, %v1766_v11 }
 0x5c5   : > { %v1798_v22 = vpack.i.b16 %v1797_v17, %v1796_v14  ;;  %v1801_v23 = vpack.i.b16 %v1792_v18, %v1767_v16  ;;  %v1803_v24 = vshrl.u32 %v1792_v18, 16 }
 0x5c7   : > { %v2141_v25 = vcombine.low %v1798_v22, %v1798_v22  ;;  %v1804_v19 = vpack.i.b16 %v1803_v24, %v1802_v20  ;;  %v2142_v35 = vcombine.low %v1801_v23, %v1801_v23 }
 0x5c9   : > { %1807 = vrot.lane.b32.xlu0 %v2141_v25, %s2756_s12  ;;  %v2143_v26 = vcombine.low %v1804_v19, %v1804_v19  ;;  %s2759_s12 = smov [#allocation17]  }
 0x5ca   : > { %s2589_s9 = sshll.u32 %s2759_s12, 4  ;;  %s2590_s9 = int_to_ptr.vmem [resolvable:$false] %s2589_s9 }
 0x5cb   : > { %1815 = vrot.lane.b32.xlu1 %v2143_v26, %s2757_s8  ;;  %s2591_s6 = scalar_lea.vmem %s2590_s9, 256  ;;  %p2592_p1 = scmp.lt.s32.totalorder %s3283_s30, %s2590_s9 }
 0x5cc   : > { %p2593_p12 = scmp.lt.s32.totalorder %s2591_s6, %s2585_s11 }
 0x5cd   : > { %1811 = vrot.lane.b32.xlu0 %v2142_v35, %s2758_s5 }
 0x5ce   : > { %p2594_p3 = por %p2593_p12, %p2592_p1 }
 0x5d0   : > { %p2595_p7 = pnand %p2594_p3, %p2588_p6 }
 0x63b   : > { %v1808_v43 = vpop.permute.xlu0 %1807 }
 0x63c   : > { %v1820_v28 = vsel %vm1546_vm7, %v1795_v21, %v1808_v43 }
 0x63d   : > { %v1816_v27 = vpop.permute.xlu1 %1815 }
 0x63f   : > { %v1812_v29 = vpop.permute.xlu0 %1811 }
 0x640   : > { %v1823_v31 = vsel %vm1593_vm8, %v1820_v28, %v1812_v29 }
 0x641   : > { %v1826_v32 = vsel %vm1824_vm9, %v1823_v31, %v1816_v27 }
 0x642   : > { %2229 = vmatmul.mubr.msk.bf16.vlgmr.msra.gmra.mxu0 %vm1324_vm4, %v1826_v32 }
 0x702   : > { %v1886_v34 = vpop.f32.mrf.mxu0 }
 0x703   : > { %v1887_v36 = vadd.f32 %v2144_v33, %v1886_v34 }
 0x704   : > { %v2230_v38 = vpop.f32.mrf.mxu0 }
 0x705   : > { %1892 = vst.msk [vmem:[%s3066_s28] sm:$0xff] %vm1324_vm4, %v1887_v36 }
 0x706   : > { %v1889_v39 = vpop.f32.mrf.mxu0 }
 0x707   : > { %2598 = shalt.err (!%p2595_p7)
}
 0x708   : > { %s2599_s28 = scalar_lea.hbm %s3281_s24, 128  ;;  %s2603_s5 = scalar_lea.hbm %s3416_s27, 512 }
 0x709   : > { %p2600_p9 = scmp.ne.s32.totalorder %s3281_s24, %s2599_s28  ;;  %p2604_p2 = scmp.lt.s32.totalorder %s3281_s24, %s3416_s27 }
 0x70a   : > { %p2605_p13 = scmp.lt.s32.totalorder %s2603_s5, %s2599_s28 }
 0x70b   : > { %p2601_p5 = pnand %p2600_p9, %p3417_p11 }
 0x70c   : > { %p2606_p8 = por %p2605_p13, %p2604_p2 }
 0x70d   : > { %p2602_p4 = pneg %p2601_p5 }
 0x70f   : > { %p2607_p10 = pnand %p2606_p8, %p2602_p4 }
 0x711   : > { %2610 = shalt.err (!%p2607_p10)
}
 0x712   : > { %2252 = dma.vmem_to_hbm [thread:$0]  (%p3417_p11), %s3283_s30, 128, %s3281_s24, %s1894_s20   ;;  %v2231_v40 = vpop.f32.mrf.mxu0 }
 0x713 PF: > { %s3418_s26 = sld [smem:[#allocation24_spill]]  ;;  %p2287_p0 = scmp.ge.s32.totalorder %s2725_s23, 2 }
 0x714   : > { %s3419_s10 = sld [smem:[#allocation30_spill]] }
 0x719   : > { %s1921_s19 = sand.u32 1, %s3418_s26  }
 0x71a   : > { %p3420_p6 = scmp.ne.s32.totalorder %s3419_s10, 0  ;;  %s1922_s25 = scalar_lea.sflag [#allocation8], %s1921_s19 }
 0x71c   : > { %p2275_p1 = pnand %p2287_p0, %p3420_p6 }
 0x71e   : > { %p2276_p12 = pneg %p2275_p1 }
 0x720   : > { %2680 = dma.done.wait (%p2276_p12), %s1922_s25, 128  }
 0x721   : > { %2682 = vsyncadd (%p2276_p12), %s1922_s25, 4294967168  ;;  %s31_s23 = sadd.s32 1, %s2725_s23   ;;  %s3421_s7 = sld [smem:[#allocation27_spill]] }
 0x722   : > { %p28_p3 = scmp.ge.s32.totalorder %s31_s23, 6   ;;  %s3422_s30 = sld [smem:[#allocation28_spill]] }
 0x723   : > { %s3423_s13 = smov %s2689_s14  ;;  %s3424_s14 = smov %s2693_s15 }
 0x724   : > { %s3425_s15 = smov %s3012_s0  ;;  %s3426_s16 = smov %s2701_s17 }
 0x725   : > { %s3427_s17 = smov %s2705_s18  ;;  %s3428_s18 = smov %s3009_s2 }
 0x726   : > { %s3429_s19 = smov %s2717_s21  ;;  %s3430_s20 = smov %s2721_s22 }
 0x727   : > { %s3431_s21 = smov %s3421_s7  ;;  %30 = sbr.rel (!%p28_p3) target bundleno = 24 (0x18), region = 160 }
 0x728   : > { %s3432_s22 = smov %s3422_s30 }
 0x72c   :  { %1927 = vsyncpa [#allocation7], 1 }
 0x72d   :  { %1929 = vsyncpa [#allocation7 + $0x1], 1 }
 0x72e   :  { %1930 = vsyncpa [#allocation10], 1 }
 0x72f   :  { %1932 = vsyncpa [#allocation10 + $0x1], 1 }
 0x730   :  { %1933 = vsyncpa [#allocation13], 1 }
 0x731   :  { %1934 = vsyncpa [#allocation16], 1 }
 0x732   :  { %1935 = vsyncpa [#allocation8], 1 }
 0x733   :  { %1937 = vsyncpa [#allocation8 + $0x1], 1 }

// kernel: tpu_custom_call.1
= control target key start
LH: loop header
LB: loop body
LE: loop exit
PB: predicated region body
PF: predicated region fallthrough
CT: control target
= control target key end

     0   :  { %s3345_s0 = inlined_call_operand.hbm [shape: bf16[2,16,32], index: 0, kind: input, shape index: {}]   ;;  %s3346_s1 = inlined_call_operand.hbm [shape: bf16[2,16,32], index: 1, kind: input, shape index: {}]   ;;  %s3347_s2 = inlined_call_operand.hbm [shape: bf16[32,32], index: 2, kind: input, shape index: {}]   ;;  %s3348_s3 = inlined_call_operand.vmem [shape: f32[1,32], index: 3, kind: input, shape index: {}]   ;;  %s3349_s4 = inlined_call_operand.hbm [shape: bf16[32,32], index: 4, kind: input, shape index: {}]   ;;  %s3350_s5 = inlined_call_operand.vmem [shape: f32[1,32], index: 5, kind: input, shape index: {}]   ;;  %s3351_s6 = inlined_call_operand.hbm [shape: bf16[32,32], index: 6, kind: input, shape index: {}]   ;;  %s3352_s7 = inlined_call_operand.vmem [shape: f32[1,32], index: 7, kind: input, shape index: {}]   ;;  %s3353_s8 = inlined_call_operand.hbm [shape: bf16[32,32], index: 8, kind: input, shape index: {}]   ;;  %s3354_s9 = inlined_call_operand.vmem [shape: f32[1,32], index: 9, kind: input, shape index: {}]   ;;  %s3355_s10 = inlined_call_operand.hbm [shape: f32[2,16,32], index: 10, kind: output, shape index: {}]  }
   0x1   :  { %3367 = sst [smem:[#allocation31_spill]] %s3345_s0 }
   0x2   :  { %3368 = sst [smem:[#allocation32_spill]] %s3347_s2 }
   0x3   :  { %3369 = sst [smem:[#allocation33_spill]] %s3348_s3 }
   0x4   :  { %3370 = sst [smem:[#allocation34_spill]] %s3349_s4 }
   0x5   :  { %3371 = sst [smem:[#allocation35_spill]] %s3350_s5 }
   0x6   :  { %3372 = sst [smem:[#allocation36_spill]] %s3351_s6 }
   0x7   :  { %3373 = sst [smem:[#allocation37_spill]] %s3352_s7 }
   0x8   :  { %3374 = sst [smem:[#allocation38_spill]] %s3353_s8 }
   0x9   :  { %3375 = sst [smem:[#allocation39_spill]] %s3354_s9 }
   0xa   :  { %3376 = sst [smem:[#allocation40_spill]] %s3355_s10 }
   0xb   :  { %15 = vsyncpa [#allocation7], 0 }
   0xc   :  { %17 = vsyncpa [#allocation7 + $0x1], 0 }
   0xd   :  { %18 = vsyncpa [#allocation10], 0 }
   0xe   :  { %20 = vsyncpa [#allocation10 + $0x1], 0 }
   0xf   :  { %21 = vsyncpa [#allocation13], 0 }
  0x10   :  { %22 = vsyncpa [#allocation16], 0 }
  0x11   :  { %23 = vsyncpa [#allocation8], 0 }
  0x12   :  { %25 = vsyncpa [#allocation8 + $0x1], 0  ;;  %s2815_s13 = smov 0   ;;  %s2817_s14 = smov 0  }
  0x13   :  { %s2819_s15 = smov 0   ;;  %s2821_s16 = smov 0  }
  0x14   :  { %s2823_s17 = smov 0   ;;  %s2825_s18 = smov 0  }
  0x15   :  { %s2827_s19 = smov 0   ;;  %s2829_s20 = smov 0  }
  0x16   :  { %s2831_s21 = smov 0   ;;  %s2833_s22 = smov 0  }
  0x17   :  { %s2835_s23 = smov 0  }
  0x18 LB: > { %3377 = sst [smem:[#allocation24_spill]] %s2685_s13  ;;  %s2871_s24 = sadd.s32 4294967295, %s2725_s23   ;;  %s2725_s23 = sphi %s2835_s23, %s31_s23   ;;  %s2721_s22 = sphi %s2833_s22, %s3432_s22   ;;  %s2717_s21 = sphi %s2831_s21, %s3431_s21   ;;  %s2713_s20 = sphi %s2829_s20, %s3430_s20   ;;  %s2709_s19 = sphi %s2827_s19, %s3429_s19   ;;  %s2705_s18 = sphi %s2825_s18, %s3428_s18   ;;  %s2701_s17 = sphi %s2823_s17, %s3427_s17   ;;  %s2697_s16 = sphi %s2821_s16, %s3426_s16   ;;  %s2693_s15 = sphi %s2819_s15, %s3425_s15   ;;  %s2689_s14 = sphi %s2817_s14, %s3424_s14   ;;  %s2685_s13 = sphi %s2815_s13, %s3423_s13  }
  0x19   : > { %3378 = sst [smem:[#allocation25_spill]] %s2709_s19  ;;  %p2070_p0 = scmp.ge.s32.totalorder %s2725_s23, 1 }
  0x1a   : > { %3379 = sst [smem:[#allocation26_spill]] %s2713_s20  ;;  %p3359_p1 = scmp.eq.s32.totalorder %s2871_s24, 0 }
  0x1b   : > { %p298_p2 = scmp.lt.s32.totalorder %s2725_s23, 5  ;;  %s2731_s26 = smov [#allocation11]  }
  0x1c   : > { %s310_s27 = sshll.u32 %s2731_s26, 4  ;;  %s2732_s29 = smov [#allocation12]   ;;  %s311_s27 = int_to_ptr.vmem [resolvable:$true] %s310_s27 }
  0x1d   : > { %p2876_p3 = pnand %p2070_p0, %p298_p2  ;;  %s326_s30 = sshll.u32 %s2732_s29, 4  ;;  %s327_s30 = int_to_ptr.vmem [resolvable:$true] %s326_s30 }
  0x1e   : > { %s2733_s11 = smov [#allocation14]   ;;  %s2436_s10 = scalar_lea.vmem %s311_s27, 256 }
  0x1f   : > { %p2254_p4 = pneg %p2876_p3  ;;  %s342_s12 = sshll.u32 %s2733_s11, 4  ;;  %s343_s12 = int_to_ptr.vmem [resolvable:$true] %s342_s12 }
  0x20   : > { %p2437_p7 = scmp.ne.s32.totalorder %s311_s27, %s2436_s10  ;;  %p2444_p10 = scmp.lt.s32.totalorder %s311_s27, %s311_s27 }
  0x21   : > { %p2884_p5 = pnand %p2254_p4, %p3359_p1  ;;  %p2445_p11 = scmp.lt.s32.totalorder %s2436_s10, %s2436_s10 }
  0x23   : > { %p2427_p6 = pneg %p2884_p5  ;;  %p2446_p12 = por %p2445_p11, %p2444_p10 }
  0x25   : > { %p2439_p8 = pnand %p2437_p7, %p2427_p6 }
  0x27   : > { %p2440_p9 = pneg %p2439_p8 }
  0x29   : > { %p2447_p13 = pnand %p2446_p12, %p2440_p9 }
  0x2b   : > { %2450 = shalt.err (!%p2447_p13)
}
  0x2c   : > { %s3357_s26 = smov 64   ;;  %s3358_s29 = smov 4  }
  0x2d   : > { %s3382_s2 = sld [smem:[#allocation32_spill]]  ;;  %s2462_s20 = scalar_lea.vmem %s327_s30, 256 }
  0x2e   : > { %p2463_p0 = scmp.ne.s32.totalorder %s327_s30, %s2462_s20  ;;  %p2470_p7 = scmp.lt.s32.totalorder %s327_s30, %s327_s30 }
  0x2f   : > { %p2471_p8 = scmp.lt.s32.totalorder %s2462_s20, %s2462_s20 }
  0x30   : > { %p2465_p2 = pnand %p2463_p0, %p2427_p6 }
  0x31   : > { %p2472_p9 = por %p2471_p8, %p2470_p7 }
  0x32   : > { %p2466_p4 = pneg %p2465_p2 }
  0x33   : > { %2257 = dma.hbm_to_vmem [thread:$0]  (!%p2884_p5), %s3382_s2, 256, %s311_s27, [#allocation10], %s3357_s26, %s3357_s26, %s3358_s29  }
  0x34   : > { %p2473_p10 = pnand %p2472_p9, %p2466_p4 }
  0x36   : > { %2476 = shalt.err (!%p2473_p10)
}
  0x37   : > { %s3383_s4 = sld [smem:[#allocation34_spill]]  ;;  %s2488_s9 = scalar_lea.vmem %s343_s12, 256 }
  0x38   : > { %p2489_p11 = scmp.ne.s32.totalorder %s343_s12, %s2488_s9  ;;  %p2496_p0 = scmp.lt.s32.totalorder %s343_s12, %s343_s12 }
  0x39   : > { %p2497_p2 = scmp.lt.s32.totalorder %s2488_s9, %s2488_s9 }
  0x3a   : > { %p2491_p12 = pnand %p2489_p11, %p2427_p6 }
  0x3b   : > { %p2498_p4 = por %p2497_p2, %p2496_p0 }
  0x3c   : > { %p2492_p13 = pneg %p2491_p12 }
  0x3d   : > { %2260 = dma.hbm_to_vmem [thread:$0]  (!%p2884_p5), %s3383_s4, 256, %s327_s30, [#allocation13], %s3357_s26, %s3357_s26, %s3358_s29  }
  0x3e   : > { %p2499_p7 = pnand %p2498_p4, %p2492_p13 }
  0x40   : > { %2502 = shalt.err (!%p2499_p7)
}
  0x41   : > { %s3384_s6 = sld [smem:[#allocation36_spill]]  ;;  %s2736_s27 = smov [#allocation15]  }
  0x42   : > { %s358_s30 = sshll.u32 %s2736_s27, 4  ;;  %s359_s30 = int_to_ptr.vmem [resolvable:$true] %s358_s30 }
  0x43   : > { %s2514_s11 = scalar_lea.vmem %s359_s30, 256  ;;  %p2522_p11 = scmp.lt.s32.totalorder %s359_s30, %s359_s30 }
  0x44   : > { %p2515_p8 = scmp.ne.s32.totalorder %s359_s30, %s2514_s11  ;;  %p2523_p12 = scmp.lt.s32.totalorder %s2514_s11, %s2514_s11 }
  0x46   : > { %p2517_p9 = pnand %p2515_p8, %p2427_p6  ;;  %p2524_p13 = por %p2523_p12, %p2522_p11 }
  0x47   : > { %2263 = dma.hbm_to_vmem [thread:$0]  (!%p2884_p5), %s3384_s6, 256, %s343_s12, [#allocation13], %s3357_s26, %s3357_s26, %s3358_s29  }
  0x48   : > { %p2518_p10 = pneg %p2517_p9 }
  0x4a   : > { %p2525_p0 = pnand %p2524_p13, %p2518_p10 }
  0x4c   : > { %2528 = shalt.err (!%p2525_p0)
}
  0x4d   : > { %s3385_s8 = sld [smem:[#allocation38_spill]]  ;;  %p57_p6 = scmp.ne.s32.totalorder %s2705_s18, %s2701_s17 }
  0x4e   : > { %p58_p2 = scmp.eq.s32.totalorder %s2725_s23, 0  ;;  %p63_p4 = scmp.ne.s32.totalorder %s2701_s17, %s2697_s16 }
  0x4f   : > { %p2282_p7 = scmp.lt.s32.totalorder %s2725_s23, 4  ;;  %s375_s9 = sand.u32 1, %s2705_s18  }
  0x50   : > { %p59_p8 = por %p58_p2, %p57_p6  ;;  %p2946_p9 = por %p3359_p1, %p63_p4 }
  0x51   : > { %s2076_s20 = sshll.u32 %s375_s9, 3  ;;  %s2153_s27 = sshll.u32 %s2721_s22, 7 }
  0x52   : > { %s3387_s0 = sld [smem:[#allocation31_spill]]  ;;  %s2737_s2 = smov [#allocation6]  }
  0x53   : > { %2266 = dma.hbm_to_vmem [thread:$0]  (!%p2884_p5), %s3385_s8, 256, %s359_s30, [#allocation16], %s3357_s26, %s3357_s26, %s3358_s29  }
  0x54   : > { %s379_s30 = scalar_lea.vmem [#allocation6], %s2076_s20  ;;  %p2956_p5 = pnand %p2282_p7, %p59_p8 }
  0x55   : > { %s386_s28 = sshll.u32 %s379_s30, 4  ;;  %s376_s26 = scalar_lea.sflag [#allocation7], %s375_s9  ;;  %s387_s28 = int_to_ptr.vmem [resolvable:$true] %s386_s28 }
  0x56   : > { %p2531_p10 = pneg %p2956_p5  ;;  %s2542_s29 = scalar_lea.vmem %s387_s28, 128 }
  0x57   : > { %p2543_p11 = scmp.ne.s32.totalorder %s387_s28, %s2542_s29  ;;  %s2547_s4 = sshll.u32 %s2737_s2, 4  ;;  %s2548_s4 = int_to_ptr.vmem [resolvable:$false] %s2547_s4 }
  0x58   : > { %s385_s10 = scalar_lea.hbm %s3387_s0, %s2153_s27  ;;  %s2549_s27 = scalar_lea.vmem %s2548_s4, 256 }
  0x59   : > { %p2545_p12 = pnand %p2543_p11, %p2531_p10  ;;  %p2550_p0 = scmp.lt.s32.totalorder %s387_s28, %s2548_s4 }
  0x5a   : > { %p2551_p6 = scmp.lt.s32.totalorder %s2549_s27, %s2542_s29 }
  0x5b   : > { %p2546_p13 = pneg %p2545_p12 }
  0x5c   : > { %p2552_p4 = por %p2551_p6, %p2550_p0 }
  0x5e   : > { %p2553_p1 = pnand %p2552_p4, %p2546_p13 }
  0x60   : > { %2556 = shalt.err (!%p2553_p1)
}
  0x61   : > { %s3389_s20 = smov 4   ;;  %s3390_s11 = smov 64  }
  0x62   : > { %2270 = dma.hbm_to_vmem [thread:$0]  (!%p2956_p5), %s385_s10, 128, %s387_s28, %s376_s26, %s3390_s11, %s3390_s11, %s3389_s20  }
  0x63   : > { %s2069_s2 = sadd.s32 4294967294, %s2725_s23   ;;  %s40_s4 = sadd.s32 1, %s2717_s21 }
  0x64   : > { %s43_s29 = sadd.s32 1, %s2721_s22  ;;  %p41_p1 = scmp.ge.s32.totalorder %s40_s4, 2 }
  0x65   : > { %s78_s9 = sadd.s32 1, %s2693_s15  ;;  %p85_p8 = scmp.ne.s32.totalorder %s2693_s15, %s2689_s14 }
  0x66   : > { %p91_p10 = scmp.ne.s32.totalorder %s2689_s14, %s2685_s13  ;;  %s3434_s4 = smov (%p41_p1, %s40_s4), 0 }
  0x67   : > { %3391 = sst [smem:[#allocation27_spill]] %s3434_s4  ;;  %s3436_s29 = smov (!%p41_p1, %s43_s29), %s2721_s22 }
  0x68   : > { %s74_s12 = ssub.s32 %s2717_s21, %s3434_s4  ;;  %p2982_p5 = por %p85_p8, %p58_p2 }
  0x69   : > { %p45_p11 = scmp.ge.s32.totalorder %s3436_s29, 2  ;;  %p3393_p12 = scmp.eq.s32.totalorder %s2871_s24, 0 }
  0x6a   : > { %p285_p0 = scmp.eq.s32.totalorder %s2871_s24, 3  ;;  %p291_p6 = scmp.eq.s32.totalorder %s2069_s2, 3 }
  0x6b   : > { %p2988_p13 = por %p91_p10, %p3393_p12  ;;  %s3438_s29 = smov (%p45_p11, %s3436_s29), 0 }
  0x6c   : > { %3395 = sst [smem:[#allocation28_spill]] %s3438_s29  ;;  %p2995_p4 = por %p285_p0, %p85_p8 }
  0x6d   : > { %p2999_p2 = por %p291_p6, %p91_p10  ;;  %s47_s16 = ssub.s32 %s2721_s22, %s3438_s29 }
  0x6e   : > { %s3396_s10 = scalar_select %p2995_p4, 1, 0 }
  0x6f   : > { %s3398_s30 = scalar_select %p2999_p2, 1, 0 }
  0x70   : > { %3397 = sst [smem:[#allocation29_spill]] %s3396_s10  ;;  %s396_s27 = sand.u32 1, %s2725_s23  }
  0x71   : > { %3399 = sst [smem:[#allocation30_spill]] %s3398_s30  ;;  %p48_p1 = scmp.eq.s32.totalorder %s47_s16, 0 }
  0x72   : > { %s75_s20 = sor.u32 %s74_s12, %s47_s16  ;;  %s3400_s11 = sadd.s32 1, %s2705_s18 }
  0x73   : > { %p76_p12 = scmp.eq.s32.totalorder %s75_s20, 0  ;;  %s398_s6 = sand.u32 1, %s2693_s15  }
  0x74   : > { %s3009_s2 = scalar_select %p48_p1, %s2705_s18, %s3400_s11  }
  0x75   : > { %s3012_s0 = scalar_select %p76_p12, %s2693_s15, %s78_s9  }
  0x76   : > { %s2080_s8 = sshll.u32 %s2721_s22, 1  ;;  %s2079_s4 = sshll.u32 %s398_s6, 2 }
  0x77   : > { %s405_s13 = sadd.s32 %s2717_s21, %s2080_s8  ;;  %s400_s30 = scalar_lea.vmem [#allocation9], %s2079_s4 }
  0x78   : > { %s2081_s10 = sshll.u32 %s405_s13, 6  ;;  %s409_s19 = sshll.u32 %s400_s30, 4  ;;  %s410_s19 = int_to_ptr.vmem [resolvable:$true] %s409_s19 }
  0x79   : > { %s407_s29 = scalar_lea.hbm %s3346_s1, %s2081_s10  ;;  %p3024_p8 = pnand %p2282_p7, %p2982_p5 }
  0x7a   : > { %s397_s9 = scalar_lea.sflag [#allocation10], %s396_s27  ;;  %s2570_s6 = scalar_lea.vmem %s410_s19, 64 }
  0x7b   : > { %p2559_p10 = pneg %p3024_p8  ;;  %p2571_p11 = scmp.ne.s32.totalorder %s410_s19, %s2570_s6 }
  0x7c   : > { %s2738_s8 = smov [#allocation9]  }
  0x7d   : > { %p2573_p0 = pnand %p2571_p11, %p2559_p10  ;;  %s2575_s5 = sshll.u32 %s2738_s8, 4  ;;  %s2576_s5 = int_to_ptr.vmem [resolvable:$false] %s2575_s5 }
  0x7e   : > { %s2577_s7 = scalar_lea.vmem %s2576_s5, 128  ;;  %p2578_p1 = scmp.lt.s32.totalorder %s410_s19, %s2576_s5 }
  0x7f   : > { %p2574_p6 = pneg %p2573_p0  ;;  %p2579_p12 = scmp.lt.s32.totalorder %s2577_s7, %s2570_s6 }
  0x81   : > { %p2580_p2 = por %p2579_p12, %p2578_p1 }
  0x83   : > { %p2581_p4 = pnand %p2580_p2, %p2574_p6 }
  0x85   : > { %2584 = shalt.err (!%p2581_p4)
}
  0x86   : > { %2273 = dma.hbm_to_vmem [thread:$0]  (!%p3024_p8), %s407_s29, 64, %s410_s19, %s397_s9  }
  0x87   : > { %418 = sbr.rel (%p2876_p3) target bundleno = 1811 (0x713), region = 60  ;;  %s420_s13 = sand.u32 (!%p2876_p3), 1, %s2701_s17  }
  0x88   : > { %s3035_s4 = sshll.u32 (!%p2876_p3), %s420_s13, 3  ;;  %s421_s26 = scalar_lea.sflag (!%p2876_p3), [#allocation7], %s420_s13 }
  0x89   : > { %s424_s10 = scalar_lea.vmem (!%p2876_p3), [#allocation6], %s3035_s4 }
  0x8c   : > { %2660 = dma.done.wait (%p2946_p9), %s421_s26, 128  }
  0x8d   : > { %2662 = vsyncadd (%p2946_p9), %s421_s26, 4294967168  ;;  %s429_s19 = sand.u32 1, %s2871_s24   ;;  %s3044_s29 = sand.u32 1, %s2689_s14  }
  0x8e   : > { %s2084_s25 = sshll.u32 %s3044_s29, 2  ;;  %s430_s30 = scalar_lea.sflag [#allocation10], %s429_s19 }
  0x8f   : > { %s3047_s16 = scalar_lea.vmem [#allocation9], %s2084_s25 }
  0x90   : > { %2664 = dma.done.wait (%p2988_p13), %s430_s30, 64  }
  0x91   : > { %2666 = vsyncadd (%p2988_p13), %s430_s30, 4294967232  ;;  %p3402_p3 = scmp.eq.s32.totalorder %s2871_s24, 0 }
  0x93   : > { %2668 = dma.done.wait (%p3402_p3), [#allocation10], 256   ;;  %p3403_p7 = pmov %p3402_p3 }
  0x94   : > { %p3404_p9 = pmov %p3402_p3 }
  0x95   : > { %2670 = vsyncadd (%p3403_p7), [#allocation10], 4294967040 }
  0x96   : > { %2672 = dma.done.wait (%p3404_p9), [#allocation13], 512   ;;  %p3405_p5 = pmov %p3402_p3 }
  0x97   : > { %p3406_p4 = pmov %p3402_p3 }
  0x98   : > { %2674 = vsyncadd (%p3405_p5), [#allocation13], 4294966784 }
  0x99   : > { %2676 = dma.done.wait (%p3406_p4), [#allocation16], 256   ;;  %p3407_p2 = pmov %p3402_p3 }
  0x9a   : > { %s2089_s3 = sshll.u32 %s3044_s29, 3  ;;  %s3408_s27 = sld [smem:[#allocation25_spill]] }
  0x9b   : > { %2678 = vsyncadd (%p3407_p2), [#allocation16], 4294967040  ;;  %s3066_s28 = scalar_lea.vmem [#allocation17], %s2089_s3 }
  0xa0   : > { %p2090_p13 = scmp.ne.s32.totalorder %s3408_s27, 0 }
  0xa1   : > { %s3409_s11 = sld [smem:[#allocation35_spill]] (!%p2090_p13)  ;;  %s2741_s12 = smov (!%p2090_p13), 112  }
  0xa2   : > { %495 = sbr.rel (%p2090_p13) target bundleno = 543 (0x21f), region = 88  ;;  %s2742_s9 = smov (!%p2090_p13), 120  }
  0xa3   : > { %s3410_s5 = sld [smem:[#allocation37_spill]] (!%p2090_p13)  ;;  %s2743_s7 = smov (!%p2090_p13), 104  }
  0xa7   : > { %v2410_v0 = vld [vmem:[#allocation12 + $0x8] sm:$0xff]   ;;  %v2739_v1 = vmov 0.0   ;;  %v2411_v2 = vld [vmem:[#allocation14 + $0x8] sm:$0xff]   ;;  %v2412_v3 = vld [vmem:[#allocation12] sm:$0xff]   ;;  %vm2740_vm0 = vmmov 0   ;;  %vm526_vm1 = vcmask 261120   ;;  %v660_v22 = vlaneseq }
  0xa8   : > { %2188 = vmatprep.subr.bf16.mxu0 %v2739_v1  ;;  %2196 = vmatprep.subr.bf16.mxu1 %v2739_v1  ;;  %v2413_v4 = vld [vmem:[#allocation14] sm:$0xff]   ;;  %v2414_v5 = vld [vmem:[%s424_s10] sm:$0xff]   ;;  %v2744_v20 = vmov 1983009808   ;;  %v2745_v23 = vmov 1934713408  }
  0xa9   : > { %2189 = vmatpush3.bf16.msra.mxu0 %v2410_v0  ;;  %2192 = vmatprep.mubr.msk.bf16.mxu0 %vm2740_vm0, %v2739_v1  ;;  %v2091_v6 = vld [vmem:[%s3409_s11] ss:$0 sm:$0xff]  ;;  %v658_v21 = vunpack.c.l.s4 %v2744_v20  ;;  %v690_v24 = vunpack.c.l.s4 %v2745_v23  ;;  %v661_v26 = vshrl.u32 %v660_v22, 7  ;;  %vm959_vm2 = vcmask 60416  }
  0xaa   : > { %2197 = vmatpush3.bf16.msra.mxu1 %v2411_v2  ;;  %2190 = vmatprep.subr.bf16.mxu0 %v2739_v1  ;;  %v2096_v12 = vld [vmem:[%s3410_s5] ss:$0 sm:$0xff] }
  0xab   : > { %2198 = vmatprep.subr.bf16.mxu1 %v2739_v1  ;;  %2200 = vmatprep.mubr.msk.bf16.mxu1 %vm2740_vm0, %v2739_v1  ;;  %v659_v25 = vunpack.c.0.s8 %v658_v21  ;;  %v691_v29 = vunpack.c.0.s8 %v690_v24 }
  0xad   : > { %2191 = vmatpush3.bf16.msra.mxu0 %v2412_v3  ;;  %v3092_v30 = vsub.s32 %v659_v25, %v661_v26  ;;  %v3094_v37 = vsub.s32 %v691_v29, %v661_v26 }
  0xae   : > { %2199 = vmatpush3.bf16.msra.mxu1 %v2413_v4 }
  0xb0   : > { %2193 = vmatmul.mubr.msk.bf16.vlgmr.msra.gmra.mxu0 %vm526_vm1, %v2414_v5 }
  0xb1   : > { %2201 = vmatmul.mubr.msk.bf16.vlgmr.msra.gmra.mxu1 %vm526_vm1, %v2414_v5 }
 0x170   : > { %v564_v7 = vpop.f32.mrf.mxu0 }
 0x171   : > { %v565_v8 = vadd.f32 %v2091_v6, %v564_v7  ;;  %v628_v9 = vpop.f32.mrf.mxu1 }
 0x172   : > { %v2194_v10 = vpop.f32.mrf.mxu0  ;;  %v3079_v17 = vadd.f32 %v2096_v12, %v628_v9 }
 0x173   : > { %643 = vrot.lane.b32.xlu1 %v565_v8, %s2741_s12  ;;  %637 = vrot.lane.b32.xlu0 %v565_v8, %s2742_s9  ;;  %v2202_v11 = vpop.f32.mrf.mxu1 }
 0x174   : > { %v567_v13 = vpop.f32.mrf.mxu0 }
 0x175   : > { %v3077_v14 = vadd.f32 %v2091_v6, %v567_v13  ;;  %v631_v15 = vpop.f32.mrf.mxu1 }
 0x176   : > { %v2195_v16 = vpop.f32.mrf.mxu0  ;;  %v3084_v19 = vadd.f32 %v2096_v12, %v631_v15 }
 0x177   : > { %649 = vrot.lane.b32.xlu0 %v565_v8, %s2743_s7  ;;  %645 = vrot.lane.b32.xlu1 %v3077_v14, %s2741_s12  ;;  %v2203_v18 = vpop.f32.mrf.mxu1 }
 0x17b   : > { %970 = vrot.lane.b32.xlu0 %v3079_v17, %s2742_s9  ;;  %651 = vrot.lane.b32.xlu1 %v3077_v14, %s2743_s7 }
 0x17f   : > { %976 = vrot.lane.b32.xlu0 %v3079_v17, %s2741_s12  ;;  %972 = vrot.lane.b32.xlu1 %v3084_v19, %s2742_s9 }
 0x183   : > { %978 = vrot.lane.b32.xlu1 %v3084_v19, %s2741_s12  ;;  %639 = vrot.lane.b32.xlu0 %v3077_v14, %s2742_s9 }
 0x187   : > { %984 = vrot.lane.b32.xlu1 %v3084_v19, %s2743_s7  ;;  %982 = vrot.lane.b32.xlu0 %v3079_v17, %s2743_s7 }
 0x1e5   : > { %v644_v27 = vpop.permute.xlu1 %643  ;;  %v638_v28 = vpop.permute.xlu0 %637 }
 0x1e6   : > { %v655_v31 = vcombine.low %v565_v8, %v644_v27  ;;  %v656_v32 = vcombine.high %v565_v8, %v644_v27 }
 0x1e8   : > { %v663_v38 = vrot.slane %v655_v31, %v3092_v30  ;;  %v670_v39 = vrot.slane %v656_v32, %v3092_v30 }
 0x1e9   : > { %v650_v33 = vpop.permute.xlu0 %649  ;;  %v646_v34 = vpop.permute.xlu1 %645 }
 0x1ea   : > { %v671_v35 = vcombine.low %v638_v28, %v650_v33  ;;  %v672_v36 = vcombine.high %v638_v28, %v650_v33  ;;  %v723_v52 = vcombine.low %v3077_v14, %v646_v34  ;;  %v724_v53 = vcombine.high %v3077_v14, %v646_v34 }
 0x1ec   : > { %v679_v40 = vrot.slane %v671_v35, %v3092_v30  ;;  %v686_v41 = vrot.slane %v672_v36, %v3092_v30  ;;  %v731_v2 = vrot.slane %v723_v52, %v3092_v30  ;;  %v738_v3 = vrot.slane %v724_v53, %v3092_v30 }
 0x1ed   : > { %v3100_v42 = vpop.permute.xlu0 %970  ;;  %v652_v43 = vpop.permute.xlu1 %651 }
 0x1ee   : > { %v687_v44 = vcombine.low %v663_v38, %v679_v40  ;;  %v688_v45 = vcombine.high %v663_v38, %v679_v40  ;;  %v703_v46 = vcombine.low %v670_v39, %v686_v41  ;;  %v704_v47 = vcombine.high %v670_v39, %v686_v41 }
 0x1f0   : > { %v695_v48 = vrot.slane %v687_v44, %v3094_v37  ;;  %v702_v49 = vrot.slane %v688_v45, %v3094_v37  ;;  %v711_v50 = vrot.slane %v703_v46, %v3094_v37  ;;  %v718_v51 = vrot.slane %v704_v47, %v3094_v37 }
 0x1f1   : > { %v977_v54 = vpop.permute.xlu0 %976  ;;  %v3108_v55 = vpop.permute.xlu1 %972 }
 0x1f2   : > { %v791_v56 = vcombine.low %v695_v48, %v702_v49  ;;  %v2100_v57 = vcombine.high %v695_v48, %v702_v49  ;;  %v807_v58 = vcombine.low %v711_v50, %v718_v51  ;;  %v2101_v59 = vcombine.high %v711_v50, %v718_v51 }
 0x1f3   : > { %v988_v60 = vcombine.low %v3079_v17, %v977_v54  ;;  %v989_v61 = vcombine.high %v3079_v17, %v977_v54 }
 0x1f4   : > { %v798_v62 = vrot.slane %v791_v56, %v3092_v30  ;;  %v806_v63 = vrot.slane %v2100_v57, %v3092_v30  ;;  %v814_v0 = vrot.slane %v807_v58, %v3092_v30  ;;  %v822_v1 = vrot.slane %v2101_v59, %v3092_v30 }
 0x1f5   : > { %v3119_v4 = vrot.slane %v988_v60, %v3092_v30  ;;  %v3122_v5 = vrot.slane %v989_v61, %v3092_v30  ;;  %v979_v6 = vpop.permute.xlu1 %978  ;;  %v640_v7 = vpop.permute.xlu0 %639 }
 0x1f6   : > { %v823_v8 = vcombine.low %v798_v62, %v806_v63  ;;  %v824_v9 = vcombine.high %v798_v62, %v806_v63  ;;  %v839_v10 = vcombine.low %v814_v0, %v822_v1  ;;  %v840_v11 = vcombine.high %v814_v0, %v822_v1 }
 0x1f7   : > { %v1056_v12 = vcombine.low %v3084_v19, %v979_v6  ;;  %v1057_v13 = vcombine.high %v3084_v19, %v979_v6  ;;  %v739_v14 = vcombine.low %v640_v7, %v652_v43  ;;  %v740_v15 = vcombine.high %v640_v7, %v652_v43 }
 0x1f8   : > { %v831_v16 = vrot.slane %v823_v8, %v3094_v37  ;;  %v838_v17 = vrot.slane %v824_v9, %v3094_v37  ;;  %v847_v18 = vrot.slane %v839_v10, %v3094_v37  ;;  %v854_v20 = vrot.slane %v840_v11, %v3094_v37 }
 0x1f9   : > { %v1064_v21 = vrot.slane %v1056_v12, %v3092_v30  ;;  %v1071_v22 = vrot.slane %v1057_v13, %v3092_v30  ;;  %v747_v23 = vrot.slane %v739_v14, %v3092_v30  ;;  %v754_v24 = vrot.slane %v740_v15, %v3092_v30  ;;  %v985_v33 = vpop.permute.xlu1 %984  ;;  %v983_v34 = vpop.permute.xlu0 %982 }
 0x1fa   : > { %v855_v25 = vcombine.low %v831_v16, %v847_v18  ;;  %v856_v19 = vcombine.high %v831_v16, %v847_v18  ;;  %v857_v26 = vcombine.low %v838_v17, %v854_v20  ;;  %v858_v27 = vcombine.high %v838_v17, %v854_v20 }
 0x1fb   : > { %v755_v28 = vcombine.low %v731_v2, %v747_v23  ;;  %v756_v29 = vcombine.high %v731_v2, %v747_v23  ;;  %v771_v31 = vcombine.low %v738_v3, %v754_v24  ;;  %v772_v32 = vcombine.high %v738_v3, %v754_v24 }
 0x1fc   : > { %v2154_v35 = vpack.c.bf16 %v855_v25, %v855_v25  ;;  %v2156_v36 = vpack.c.bf16 %v856_v19, %v856_v19  ;;  %v2158_v38 = vpack.c.bf16 %v857_v26, %v857_v26  ;;  %v2160_v39 = vpack.c.bf16 %v858_v27, %v858_v27 }
 0x1fd   : > { %v763_v40 = vrot.slane %v755_v28, %v3094_v37  ;;  %v770_v41 = vrot.slane %v756_v29, %v3094_v37  ;;  %v779_v43 = vrot.slane %v771_v31, %v3094_v37  ;;  %v786_v44 = vrot.slane %v772_v32, %v3094_v37 }
 0x1fe   : > { %960 = vst.msk [vmem:[#allocation2] sm:$0xf] %vm959_vm2, %v2154_v35  ;;  %962 = vst.msk [vmem:[#allocation2 + $0x8] sm:$0xf] %vm959_vm2, %v2156_v36  ;;  %v1072_v45 = vcombine.low %v3108_v55, %v985_v33  ;;  %v1073_v46 = vcombine.high %v3108_v55, %v985_v33  ;;  %v1004_v47 = vcombine.low %v3100_v42, %v983_v34 }
 0x1ff   : > { %964 = vst.msk [vmem:[#allocation2 + $0x10] sm:$0xf] %vm959_vm2, %v2158_v38  ;;  %966 = vst.msk [vmem:[#allocation2 + $0x18] sm:$0xf] %vm959_vm2, %v2160_v39  ;;  %v1005_v48 = vcombine.high %v3100_v42, %v983_v34  ;;  %v859_v49 = vcombine.low %v763_v40, %v770_v41  ;;  %v2102_v50 = vcombine.high %v763_v40, %v770_v41 }
 0x200   : > { %v875_v51 = vcombine.low %v779_v43, %v786_v44  ;;  %v2103_v52 = vcombine.high %v779_v43, %v786_v44  ;;  %v1080_v53 = vrot.slane %v1072_v45, %v3092_v30  ;;  %v1087_v54 = vrot.slane %v1073_v46, %v3092_v30 }
 0x201   : > { %v1012_v56 = vrot.slane %v1004_v47, %v3092_v30  ;;  %v1019_v57 = vrot.slane %v1005_v48, %v3092_v30  ;;  %v866_v58 = vrot.slane %v859_v49, %v3092_v30  ;;  %v874_v55 = vrot.slane %v2102_v50, %v3092_v30 }
 0x202   : > { %v882_v59 = vrot.slane %v875_v51, %v3092_v30  ;;  %v890_v42 = vrot.slane %v2103_v52, %v3092_v30  ;;  %v1088_v60 = vcombine.low %v1064_v21, %v1080_v53  ;;  %v1089_v61 = vcombine.high %v1064_v21, %v1080_v53 }
 0x203   : > { %v1104_v62 = vcombine.low %v1071_v22, %v1087_v54  ;;  %v1105_v63 = vcombine.high %v1071_v22, %v1087_v54  ;;  %v891_v0 = vcombine.low %v866_v58, %v874_v55  ;;  %v892_v1 = vcombine.high %v866_v58, %v874_v55 }
 0x204   : > { %v907_v2 = vcombine.low %v882_v59, %v890_v42  ;;  %v908_v3 = vcombine.high %v882_v59, %v890_v42  ;;  %v1096_v6 = vrot.slane %v1088_v60, %v3094_v37  ;;  %v1103_v7 = vrot.slane %v1089_v61, %v3094_v37 }
 0x205   : > { %v1112_v8 = vrot.slane %v1104_v62, %v3094_v37  ;;  %v1119_v9 = vrot.slane %v1105_v63, %v3094_v37  ;;  %v899_v10 = vrot.slane %v891_v0, %v3094_v37  ;;  %v906_v11 = vrot.slane %v892_v1, %v3094_v37 }
 0x206   : > { %v915_v12 = vrot.slane %v907_v2, %v3094_v37  ;;  %v922_v13 = vrot.slane %v908_v3, %v3094_v37  ;;  %v1192_v14 = vcombine.low %v1096_v6, %v1103_v7  ;;  %v2114_v15 = vcombine.high %v1096_v6, %v1103_v7 }
 0x207   : > { %v1208_v16 = vcombine.low %v1112_v8, %v1119_v9  ;;  %v2115_v17 = vcombine.high %v1112_v8, %v1119_v9  ;;  %v1020_v35 = vcombine.low %v3119_v4, %v1012_v56  ;;  %v1021_v36 = vcombine.high %v3119_v4, %v1012_v56 }
 0x208   : > { %v923_v18 = vcombine.low %v899_v10, %v915_v12  ;;  %v924_v20 = vcombine.high %v899_v10, %v915_v12  ;;  %v925_v21 = vcombine.low %v906_v11, %v922_v13  ;;  %v926_v22 = vcombine.high %v906_v11, %v922_v13 }
 0x209   : > { %v1199_v23 = vrot.slane %v1192_v14, %v3092_v30  ;;  %v1207_v24 = vrot.slane %v2114_v15, %v3092_v30  ;;  %v1215_v25 = vrot.slane %v1208_v16, %v3092_v30  ;;  %v1223_v19 = vrot.slane %v2115_v17, %v3092_v30 }
 0x20a   : > { %v2155_v26 = vpack.c.bf16 %v923_v18, %v923_v18  ;;  %v2157_v27 = vpack.c.bf16 %v924_v20, %v924_v20  ;;  %v2159_v28 = vpack.c.bf16 %v925_v21, %v925_v21  ;;  %v2161_v29 = vpack.c.bf16 %v926_v22, %v926_v22 }
 0x20b   : > { %v1224_v31 = vcombine.low %v1199_v23, %v1207_v24  ;;  %v1225_v32 = vcombine.high %v1199_v23, %v1207_v24  ;;  %v1240_v33 = vcombine.low %v1215_v25, %v1223_v19  ;;  %v1241_v34 = vcombine.high %v1215_v25, %v1223_v19 }
 0x20c   : > { %961 = vst.msk [vmem:[#allocation2 + $0x4] sm:$0xf] %vm959_vm2, %v2155_v26  ;;  %963 = vst.msk [vmem:[#allocation2 + $0xc] sm:$0xf] %vm959_vm2, %v2157_v27  ;;  %v1036_v38 = vcombine.low %v3122_v5, %v1019_v57  ;;  %v1037_v39 = vcombine.high %v3122_v5, %v1019_v57  ;;  %v1028_v45 = vrot.slane %v1020_v35, %v3094_v37 }
 0x20d   : > { %965 = vst.msk [vmem:[#allocation2 + $0x14] sm:$0xf] %vm959_vm2, %v2159_v28  ;;  %967 = vst.msk [vmem:[#allocation2 + $0x1c] sm:$0xf] %vm959_vm2, %v2161_v29  ;;  %v1232_v40 = vrot.slane %v1224_v31, %v3094_v37  ;;  %v1239_v41 = vrot.slane %v1225_v32, %v3094_v37  ;;  %v1248_v43 = vrot.slane %v1240_v33, %v3094_v37 }
 0x20e   : > { %v1255_v44 = vrot.slane %v1241_v34, %v3094_v37  ;;  %v1035_v46 = vrot.slane %v1021_v36, %v3094_v37  ;;  %v1044_v47 = vrot.slane %v1036_v38, %v3094_v37  ;;  %v1051_v4 = vrot.slane %v1037_v39, %v3094_v37 }
 0x20f   : > { %v1256_v48 = vcombine.low %v1232_v40, %v1248_v43  ;;  %v1257_v49 = vcombine.high %v1232_v40, %v1248_v43 }
 0x210   : > { %v1258_v50 = vcombine.low %v1239_v41, %v1255_v44  ;;  %v1259_v5 = vcombine.high %v1239_v41, %v1255_v44  ;;  %v1124_v51 = vcombine.low %v1028_v45, %v1035_v46  ;;  %v2112_v52 = vcombine.high %v1028_v45, %v1035_v46 }
 0x211   : > { %v1140_v53 = vcombine.low %v1044_v47, %v1051_v4  ;;  %v2113_v54 = vcombine.high %v1044_v47, %v1051_v4  ;;  %v2163_v56 = vpack.c.bf16 %v1256_v48, %v1256_v48  ;;  %v2165_v57 = vpack.c.bf16 %v1257_v49, %v1257_v49 }
 0x212   : > { %v2167_v58 = vpack.c.bf16 %v1258_v50, %v1258_v50  ;;  %v2169_v55 = vpack.c.bf16 %v1259_v5, %v1259_v5  ;;  %v1131_v59 = vrot.slane %v1124_v51, %v3092_v30  ;;  %v1139_v42 = vrot.slane %v2112_v52, %v3092_v30 }
 0x213   : > { %v1147_v60 = vrot.slane %v1140_v53, %v3092_v30  ;;  %v1155_v61 = vrot.slane %v2113_v54, %v3092_v30  ;;  %1293 = vst.msk [vmem:[#allocation3 + $0x4] sm:$0xf] %vm959_vm2, %v2163_v56  ;;  %1295 = vst.msk [vmem:[#allocation3 + $0xc] sm:$0xf] %vm959_vm2, %v2165_v57 }
 0x214   : > { %1297 = vst.msk [vmem:[#allocation3 + $0x14] sm:$0xf] %vm959_vm2, %v2167_v58  ;;  %1299 = vst.msk [vmem:[#allocation3 + $0x1c] sm:$0xf] %vm959_vm2, %v2169_v55  ;;  %v1156_v62 = vcombine.low %v1131_v59, %v1139_v42  ;;  %v1157_v63 = vcombine.high %v1131_v59, %v1139_v42 }
 0x215   : > { %v1172_v0 = vcombine.low %v1147_v60, %v1155_v61  ;;  %v1173_v1 = vcombine.high %v1147_v60, %v1155_v61 }
 0x216   : > { %v1164_v2 = vrot.slane %v1156_v62, %v3094_v37  ;;  %v1171_v3 = vrot.slane %v1157_v63, %v3094_v37 }
 0x217   : > { %v1180_v6 = vrot.slane %v1172_v0, %v3094_v37  ;;  %v1187_v30 = vrot.slane %v1173_v1, %v3094_v37 }
 0x219   : > { %v1188_v7 = vcombine.low %v1164_v2, %v1180_v6  ;;  %v1189_v8 = vcombine.high %v1164_v2, %v1180_v6  ;;  %v1190_v9 = vcombine.low %v1171_v3, %v1187_v30  ;;  %v1191_v10 = vcombine.high %v1171_v3, %v1187_v30 }
 0x21b   : > { %v2162_v11 = vpack.c.bf16 %v1188_v7, %v1188_v7  ;;  %v2164_v12 = vpack.c.bf16 %v1189_v8, %v1189_v8  ;;  %v2166_v13 = vpack.c.bf16 %v1190_v9, %v1190_v9  ;;  %v2168_v14 = vpack.c.bf16 %v1191_v10, %v1191_v10 }
 0x21d   : > { %1292 = vst.msk [vmem:[#allocation3] sm:$0xf] %vm959_vm2, %v2162_v11  ;;  %1294 = vst.msk [vmem:[#allocation3 + $0x8] sm:$0xf] %vm959_vm2, %v2164_v12 }
 0x21e   : > { %1296 = vst.msk [vmem:[#allocation3 + $0x10] sm:$0xf] %vm959_vm2, %v2166_v13  ;;  %1298 = vst.msk [vmem:[#allocation3 + $0x18] sm:$0xf] %vm959_vm2, %v2168_v14 }
 0x21f PF: > { %v2415_v15 = vld [vmem:[#allocation11 + $0x8] sm:$0xff]   ;;  %v2746_v37 = vmov 0.0   ;;  %v2416_v16 = vld [vmem:[#allocation11] sm:$0xff]   ;;  %vm2747_vm3 = vmmov 0   ;;  %v1300_v17 = vld [vmem:[%s3047_s16] sm:$0xf]  ;;  %v1383_v26 = vlaneseq }
 0x220   : > { %2204 = vmatprep.subr.bf16.mxu0 %v2746_v37  ;;  %2208 = vmatprep.mubr.msk.bf16.mxu0 %vm2747_vm3, %v2746_v37  ;;  %vm1324_vm4 = vcmask 261120   ;;  %s3411_s26 = sld [smem:[#allocation33_spill]]  ;;  %s2748_s10 = smov 104   ;;  %v2751_v25 = vmov 1983009808   ;;  %vm1518_vm5 = vcmask 60416  }
 0x221   : > { %2205 = vmatpush3.bf16.msra.mxu0 %v2415_v15  ;;  %s2749_s19 = smov 120   ;;  %s2750_s25 = smov 112   ;;  %v1381_v19 = vunpack.c.l.s4 %v2751_v25  ;;  %v2752_v27 = vmov 1934713408   ;;  %v1384_v31 = vshrl.u32 %v1383_v26, 7 }
 0x222   : > { %2206 = vmatprep.subr.bf16.mxu0 %v2746_v37  ;;  %v1413_v28 = vunpack.c.l.s4 %v2752_v27  ;;  %s3231_s30 = smov 0  }
 0x223   : > { %v1382_v29 = vunpack.c.0.s8 %v1381_v19 }
 0x224   : > { %v1414_v34 = vunpack.c.0.s8 %v1413_v28 }
 0x225   : > { %2207 = vmatpush3.bf16.msra.mxu0 %v2416_v16  ;;  %v3207_v35 = vsub.s32 %v1382_v29, %v1384_v31 }
 0x226   : > { %v2124_v18 = vld [vmem:[%s3411_s26] ss:$0 sm:$0xff]  ;;  %v3209_v43 = vsub.s32 %v1414_v34, %v1384_v31 }
 0x228   : > { %2209 = vmatmul.mubr.msk.bf16.vlgmr.msra.gmra.mxu0 %vm1324_vm4, %v1300_v17 }
 0x2e8   : > { %v1362_v20 = vpop.f32.mrf.mxu0 }
 0x2e9   : > { %v1363_v21 = vadd.f32 %v2124_v18, %v1362_v20 }
 0x2ea   : > { %v2210_v22 = vpop.f32.mrf.mxu0 }
 0x2eb   : > { %1375 = vrot.lane.b32.xlu1 %v1363_v21, %s2748_s10  ;;  %1369 = vrot.lane.b32.xlu0 %v1363_v21, %s2749_s19 }
 0x2ec   : > { %v1365_v23 = vpop.f32.mrf.mxu0 }
 0x2ee   : > { %v2211_v24 = vpop.f32.mrf.mxu0 }
 0x2ef   : > { %1372 = vrot.lane.b32.xlu0 %v1363_v21, %s2750_s25 }
 0x35d   : > { %v1376_v32 = vpop.permute.xlu1 %1375  ;;  %v1370_v33 = vpop.permute.xlu0 %1369 }
 0x35e   : > { %v1394_v36 = vcombine.low %v1370_v33, %v1376_v32  ;;  %v1395_v38 = vcombine.high %v1370_v33, %v1376_v32 }
 0x360   : > { %v1402_v44 = vrot.slane %v1394_v36, %v3207_v35  ;;  %v1409_v45 = vrot.slane %v1395_v38, %v3207_v35 }
 0x361   : > { %v1373_v39 = vpop.permute.xlu0 %1372 }
 0x362   : > { %v1378_v40 = vcombine.low %v1363_v21, %v1373_v39  ;;  %v1379_v41 = vcombine.high %v1363_v21, %v1373_v39 }
 0x364   : > { %v1386_v46 = vrot.slane %v1378_v40, %v3207_v35  ;;  %v1393_v47 = vrot.slane %v1379_v41, %v3207_v35 }
 0x366   : > { %v1410_v4 = vcombine.low %v1386_v46, %v1402_v44  ;;  %v1411_v48 = vcombine.high %v1386_v46, %v1402_v44  ;;  %v1426_v49 = vcombine.low %v1393_v47, %v1409_v45  ;;  %v1427_v50 = vcombine.high %v1393_v47, %v1409_v45 }
 0x368   : > { %v1418_v5 = vrot.slane %v1410_v4, %v3209_v43  ;;  %v1425_v51 = vrot.slane %v1411_v48, %v3209_v43  ;;  %v1434_v52 = vrot.slane %v1426_v49, %v3209_v43  ;;  %v1441_v53 = vrot.slane %v1427_v50, %v3209_v43 }
 0x36a   : > { %v1446_v54 = vcombine.low %v1418_v5, %v1425_v51  ;;  %v2128_v56 = vcombine.high %v1418_v5, %v1425_v51  ;;  %v1462_v57 = vcombine.low %v1434_v52, %v1441_v53  ;;  %v2129_v58 = vcombine.high %v1434_v52, %v1441_v53 }
 0x36c   : > { %v1453_v55 = vrot.slane %v1446_v54, %v3207_v35  ;;  %v1461_v59 = vrot.slane %v2128_v56, %v3207_v35  ;;  %v1469_v42 = vrot.slane %v1462_v57, %v3207_v35  ;;  %v1477_v60 = vrot.slane %v2129_v58, %v3207_v35 }
 0x36e   : > { %v1478_v61 = vcombine.low %v1453_v55, %v1461_v59  ;;  %v1479_v62 = vcombine.high %v1453_v55, %v1461_v59  ;;  %v1494_v63 = vcombine.low %v1469_v42, %v1477_v60  ;;  %v1495_v0 = vcombine.high %v1469_v42, %v1477_v60 }
 0x370   : > { %v1486_v1 = vrot.slane %v1478_v61, %v3209_v43  ;;  %v1493_v2 = vrot.slane %v1479_v62, %v3209_v43  ;;  %v1502_v3 = vrot.slane %v1494_v63, %v3209_v43  ;;  %v1509_v6 = vrot.slane %v1495_v0, %v3209_v43 }
 0x372   : > { %v1510_v30 = vcombine.low %v1486_v1, %v1502_v3  ;;  %v1511_v7 = vcombine.high %v1486_v1, %v1502_v3  ;;  %v1512_v8 = vcombine.low %v1493_v2, %v1509_v6  ;;  %v1513_v9 = vcombine.high %v1493_v2, %v1509_v6 }
 0x374   : > { %v1514_v10 = vpack.c.bf16 %v1510_v30, %v1510_v30  ;;  %v1515_v11 = vpack.c.bf16 %v1511_v7, %v1511_v7  ;;  %v1516_v12 = vpack.c.bf16 %v1512_v8, %v1512_v8  ;;  %v1517_v13 = vpack.c.bf16 %v1513_v9, %v1513_v9 }
 0x376   : > { %1519 = vst.msk [vmem:[#allocation4] sm:$0xf] %vm1518_vm5, %v1514_v10  ;;  %1520 = vst.msk [vmem:[#allocation4 + $0x4] sm:$0xf] %vm1518_vm5, %v1515_v11 }
 0x377   : > { %1521 = vst.msk [vmem:[#allocation4 + $0x8] sm:$0xf] %vm1518_vm5, %v1516_v12  ;;  %1522 = vst.msk [vmem:[#allocation4 + $0xc] sm:$0xf] %vm1518_vm5, %v1517_v13 }
 0x378 LB: >> { %v2753_v14 = vmov 0.0   ;;  %vm2754_vm6 = vmmov 0   ;;  %s2170_s16 = sshll.u32 %s2729_s30, 3  ;;  %vm1546_vm7 = vcmask 64512   ;;  %s2130_s27 = sshll.u32 %s2729_s30, 2  ;;  %vm1593_vm8 = vcmask 130048   ;;  %s2729_s30 = sphi %s3231_s30, %s1528_s30  }
 0x379   : >> { %2212 = vmatprep.subr.bf16.mxu0 %v2753_v14  ;;  %2214 = vmatprep.mubr.msk.bf16.mxu0 %vm2754_vm6, %v2753_v14  ;;  %s1534_s3 = scalar_lea.vmem [#allocation2], %s2170_s16  ;;  %s1530_s24 = scalar_lea.vmem [#allocation4], %s2130_s27 }
 0x37a   : >> { %2218 = vmatprep.subr.bf16.mxu1 %v2753_v14  ;;  %2220 = vmatprep.mubr.msk.bf16.mxu1 %vm2754_vm6, %v2753_v14  ;;  %v2417_v15 = vld [vmem:[%s1534_s3] sm:$0xff]   ;;  %s1538_s20 = scalar_lea.vmem [#allocation3], %s2170_s16  ;;  %s1657_s11 = scalar_lea.vmem [#allocation5], %s2130_s27 }
 0x37b   : >> { %v1551_v16 = vsel %vm1546_vm7, %v2417_v15, 0  ;;  %v2418_v24 = vld [vmem:[%s1538_s20] sm:$0xff]   ;;  %s1528_s30 = sadd.s32 1, %s2729_s30  }
 0x37c   : >> { %2213 = vmatpush3.bf16.xpose.msra.mxu0 %v1551_v16  ;;  %2219 = vmatpush3.bf16.msra.mxu1 %v2418_v24  ;;  %p1525_p8 = scmp.ge.s32.totalorder %s1528_s30, 4  }
 0x37d   : > { %2224 = vmatprep.subr.bf16.mxu0 (%p1525_p8), %v2746_v37  ;;  %v2423_v53 = vld [vmem:[#allocation15 + $0x8] sm:$0xff] (%p1525_p8)   ;;  %v2424_v8 = vld [vmem:[#allocation15] sm:$0xff] (%p1525_p8)   ;;  %v2755_v15 = vmov (%p1525_p8), 0   ;;  %s2756_s12 = smov (%p1525_p8), 8   ;;  %s3412_s9 = sld [smem:[#allocation26_spill]] (%p1525_p8)  ;;  %vm1824_vm9 = vcmask (%p1525_p8), 195584  }
 0x37e   : >> { %v1531_v17 = vld [vmem:[%s1530_s24] sm:$0xf]  ;;  %s3413_s6 = sld [smem:[#allocation25_spill]] (%p1525_p8)  ;;  %s2757_s8 = smov (%p1525_p8), 24  }
 0x37f   : > { %s2758_s5 = smov (%p1525_p8), 16   ;;  %s3414_s7 = sld [smem:[#allocation29_spill]] (%p1525_p8) }
 0x380   : > { %s3415_s19 = sld [smem:[#allocation39_spill]] (%p1525_p8)  ;;  %s1909_s30 = sshll.u32 (%p1525_p8), %s3066_s28, 4  ;;  %s3283_s30 = int_to_ptr.vmem [resolvable:$true] %s1909_s30 }
 0x381   : > { %s3416_s27 = sld [smem:[#allocation40_spill]] (%p1525_p8)  ;;  %s1894_s20 = scalar_lea.sflag (%p1525_p8), [#allocation8], %s3044_s29 }
 0x383   : >> { %2215 = vmatmul.mubr.msk.bf16.vlgmr.msra.gmra.mxu0 %vm1546_vm7, %v1531_v17  ;;  %s2149_s13 = sshll.u32 (%p1525_p8), %s3412_s9, 1 }
 0x384   : > { %2228 = vmatprep.mubr.msk.bf16.mxu0 (%p1525_p8), %vm2747_vm3, %v2746_v37  ;;  %2225 = vmatpush3.bf16.msra.mxu0 (%p1525_p8), %v2423_v53  ;;  %s1905_s4 = sadd.s32 (%p1525_p8), %s3413_s6, %s2149_s13 }
 0x385   : > { %2226 = vmatprep.subr.bf16.mxu0 (%p1525_p8), %v2746_v37  ;;  %s2150_s25 = sshll.u32 (%p1525_p8), %s1905_s4, 7  ;;  %p3417_p11 = scmp.ne.s32.totalorder (%p1525_p8), %s3414_s7, 0 }
 0x387   : > { %s3281_s24 = scalar_lea.hbm (%p1525_p8), %s3416_s27, %s2150_s25 }
 0x388   : > { %2227 = vmatpush3.bf16.msra.mxu0 (%p1525_p8), %v2424_v8 }
 0x443   : >> { %v1587_v18 = vpop.f32.mrf.mxu0 }
 0x444   : >> { %v1594_v20 = vsel %vm1593_vm8, %v1587_v18, -inf }
 0x445   : >> { %1595 = vmax.xlane.f32.xlu0 %v1594_v20  ;;  %v2216_v21 = vpop.f32.mrf.mxu0 }
 0x447   : >> { %v1590_v22 = vpop.f32.mrf.mxu0 }
 0x449   : >> { %v2217_v23 = vpop.f32.mrf.mxu0 }
 0x4ce   : >> { %v1596_v25 = vpop.xlane.xlu0 %1595 }
 0x4cf   : >> { %v1597_v19 = vsub.f32 %v1587_v18, %v1596_v25 }
 0x4d1   : >> { %v1598_v26 = vmul.f32 1.442695, %v1597_v19 }
 0x4d3   : >> { %2419 = vpow2.f32 %v1598_v26 }
 0x4e0   : >> { %v2420_v27 = vpop.eup %2419 }
 0x4e1   : >> { %v1600_v28 = vsel %vm1593_vm8, %v2420_v27, 0.0  ;;  %v1603_v29 = vpack.c.bf16 %v2420_v27, %v2420_v27 }
 0x4e2   : >> { %1601 = vadd.xlane.f32.xlu0 %v1600_v28 }
 0x4e3   : >> { %2221 = vmatmul.mubr.msk.bf16.vlgmr.msra.gmra.mxu1 %vm1593_vm8, %v1603_v29 }
 0x56b   : >> { %v1602_v31 = vpop.xlane.xlu0 %1601 }
 0x56c   : >> { %2421 = vrcp.f32 %v1602_v31 }
 0x579   : >> { %v2422_v32 = vpop.eup %2421 }
 0x5a3   : >> { %v1647_v33 = vpop.f32.mrf.mxu1 }
 0x5a4   : >> { %v1654_v34 = vmul.f32 %v2422_v32, %v1647_v33  ;;  %v2144_v33 = vld [vmem:[%s3415_s19] ss:$0 sm:$0xff] (%p1525_p8) }
 0x5a5   : >> { %v2222_v36 = vpop.f32.mrf.mxu1  ;;  %1527 = sbr.rel (!%p1525_p8) target bundleno = 888 (0x378), region = 149 }
 0x5a6   : >> { %v1655_v38 = vpack.c.bf16 %v1654_v34, %v1654_v34 }
 0x5a7   : >> { %v1650_v39 = vpop.f32.mrf.mxu1 }
 0x5a8   : >> { %1658 = vst.msk [vmem:[%s1657_s11] sm:$0xf] %vm1518_vm5, %v1655_v38  ;;  %s2585_s11 = scalar_lea.vmem (%p1525_p8), %s3283_s30, 128 }
 0x5a9   : >> { %v2223_v40 = vpop.f32.mrf.mxu1  ;;  %p2586_p10 = scmp.ne.s32.totalorder (%p1525_p8), %s3283_s30, %s2585_s11 }
 0x5ab   : > { %p2587_p0 = pnand %p2586_p10, %p3417_p11 }
 0x5ad   : > { %p2588_p6 = pneg %p2587_p0 }
 0x5af   : > { %v1659_v41 = vld [vmem:[#allocation5] sm:$0xf]  ;;  %v1660_v44 = vld [vmem:[#allocation5 + $0x4] sm:$0xf]  ;;  %v1661_v45 = vld [vmem:[#allocation5 + $0x8] sm:$0xf] }
 0x5b0   : > { %v1662_v46 = vld [vmem:[#allocation5 + $0xc] sm:$0xf]  ;;  %v1665_v47 = vpack.i.b16 %v1660_v44, %v1659_v41  ;;  %v1666_v4 = vshrl.u32 %v1659_v41, 16  ;;  %v1667_v48 = vshrl.u32 %v1660_v44, 16  ;;  %v1672_v49 = vshrl.u32 %v1661_v45, 16 }
 0x5b1   : > { %v1671_v50 = vpack.i.b16 %v1662_v46, %v1661_v45  ;;  %v1673_v5 = vshrl.u32 %v1662_v46, 16 }
 0x5b2   : > { %v1668_v51 = vpack.i.b16 %v1667_v48, %v1666_v4  ;;  %v1682_v52 = vrot.slane %v1665_v47, %v3207_v35 }
 0x5b3   : > { %v1674_v54 = vpack.i.b16 %v1673_v5, %v1672_v49  ;;  %v1690_v56 = vrot.slane %v1671_v50, %v3207_v35 }
 0x5b4   : > { %v1716_v57 = vrot.slane %v1668_v51, %v3207_v35 }
 0x5b5   : > { %v1691_v58 = vcombine.low %v1682_v52, %v1690_v56  ;;  %v1692_v55 = vcombine.high %v1682_v52, %v1690_v56  ;;  %v1724_v59 = vrot.slane %v1674_v54, %v3207_v35 }
 0x5b7   : > { %v1699_v42 = vrot.slane %v1691_v58, %v3209_v43  ;;  %v1706_v60 = vrot.slane %v1692_v55, %v3209_v43  ;;  %v1725_v61 = vcombine.low %v1716_v57, %v1724_v59  ;;  %v1726_v62 = vcombine.high %v1716_v57, %v1724_v59 }
 0x5b9   : > { %v1733_v63 = vrot.slane %v1725_v61, %v3209_v43  ;;  %v1740_v0 = vrot.slane %v1726_v62, %v3209_v43  ;;  %v1743_v1 = vcombine.low %v1699_v42, %v1706_v60  ;;  %v2139_v2 = vcombine.high %v1699_v42, %v1706_v60 }
 0x5bb   : > { %v1750_v3 = vrot.slane %v1743_v1, %v3207_v35  ;;  %v1758_v6 = vrot.slane %v2139_v2, %v3207_v35  ;;  %v1768_v30 = vcombine.low %v1733_v63, %v1740_v0  ;;  %v2140_v7 = vcombine.high %v1733_v63, %v1740_v0 }
 0x5bd   : > { %v1759_v37 = vcombine.low %v1750_v3, %v1758_v6  ;;  %v1775_v9 = vrot.slane %v1768_v30, %v3207_v35  ;;  %v1783_v10 = vrot.slane %v2140_v7, %v3207_v35 }
 0x5bf   : > { %v1766_v11 = vrot.slane %v1759_v37, %v3209_v43  ;;  %v1784_v12 = vcombine.low %v1775_v9, %v1783_v10 }
 0x5c1   : > { %v1791_v13 = vrot.slane %v1784_v12, %v3209_v43  ;;  %v1796_v14 = vshrl.u32 %v1766_v11, 16  ;;  %v1767_v16 = vcombine.high %v1766_v11, %v2755_v15 }
 0x5c3   : > { %v1797_v17 = vshrl.u32 %v1791_v13, 16  ;;  %v1792_v18 = vcombine.high %v1791_v13, %v2755_v15  ;;  %v1802_v20 = vshrl.u32 %v1767_v16, 16  ;;  %v1795_v21 = vpack.i.b16 %v1791_v13, %v1766_v11 }
 0x5c5   : > { %v1798_v22 = vpack.i.b16 %v1797_v17, %v1796_v14  ;;  %v1801_v23 = vpack.i.b16 %v1792_v18, %v1767_v16  ;;  %v1803_v24 = vshrl.u32 %v1792_v18, 16 }
 0x5c7   : > { %v2141_v25 = vcombine.low %v1798_v22, %v1798_v22  ;;  %v1804_v19 = vpack.i.b16 %v1803_v24, %v1802_v20  ;;  %v2142_v35 = vcombine.low %v1801_v23, %v1801_v23 }
 0x5c9   : > { %1807 = vrot.lane.b32.xlu0 %v2141_v25, %s2756_s12  ;;  %v2143_v26 = vcombine.low %v1804_v19, %v1804_v19  ;;  %s2759_s12 = smov [#allocation17]  }
 0x5ca   : > { %s2589_s9 = sshll.u32 %s2759_s12, 4  ;;  %s2590_s9 = int_to_ptr.vmem [resolvable:$false] %s2589_s9 }
 0x5cb   : > { %1815 = vrot.lane.b32.xlu1 %v2143_v26, %s2757_s8  ;;  %s2591_s6 = scalar_lea.vmem %s2590_s9, 256  ;;  %p2592_p1 = scmp.lt.s32.totalorder %s3283_s30, %s2590_s9 }
 0x5cc   : > { %p2593_p12 = scmp.lt.s32.totalorder %s2591_s6, %s2585_s11 }
 0x5cd   : > { %1811 = vrot.lane.b32.xlu0 %v2142_v35, %s2758_s5 }
 0x5ce   : > { %p2594_p3 = por %p2593_p12, %p2592_p1 }
 0x5d0   : > { %p2595_p7 = pnand %p2594_p3, %p2588_p6 }
 0x63b   : > { %v1808_v43 = vpop.permute.xlu0 %1807 }
 0x63c   : > { %v1820_v28 = vsel %vm1546_vm7, %v1795_v21, %v1808_v43 }
 0x63d   : > { %v1816_v27 = vpop.permute.xlu1 %1815 }
 0x63f   : > { %v1812_v29 = vpop.permute.xlu0 %1811 }
 0x640   : > { %v1823_v31 = vsel %vm1593_vm8, %v1820_v28, %v1812_v29 }
 0x641   : > { %v1826_v32 = vsel %vm1824_vm9, %v1823_v31, %v1816_v27 }
 0x642   : > { %2229 = vmatmul.mubr.msk.bf16.vlgmr.msra.gmra.mxu0 %vm1324_vm4, %v1826_v32 }
 0x702   : > { %v1886_v34 = vpop.f32.mrf.mxu0 }
 0x703   : > { %v1887_v36 = vadd.f32 %v2144_v33, %v1886_v34 }
 0x704   : > { %v2230_v38 = vpop.f32.mrf.mxu0 }
 0x705   : > { %1892 = vst.msk [vmem:[%s3066_s28] sm:$0xff] %vm1324_vm4, %v1887_v36 }
 0x706   : > { %v1889_v39 = vpop.f32.mrf.mxu0 }
 0x707   : > { %2598 = shalt.err (!%p2595_p7)
}
 0x708   : > { %s2599_s28 = scalar_lea.hbm %s3281_s24, 128  ;;  %s2603_s5 = scalar_lea.hbm %s3416_s27, 512 }
 0x709   : > { %p2600_p9 = scmp.ne.s32.totalorder %s3281_s24, %s2599_s28  ;;  %p2604_p2 = scmp.lt.s32.totalorder %s3281_s24, %s3416_s27 }
 0x70a   : > { %p2605_p13 = scmp.lt.s32.totalorder %s2603_s5, %s2599_s28 }
 0x70b   : > { %p2601_p5 = pnand %p2600_p9, %p3417_p11 }
 0x70c   : > { %p2606_p8 = por %p2605_p13, %p2604_p2 }
 0x70d   : > { %p2602_p4 = pneg %p2601_p5 }
 0x70f   : > { %p2607_p10 = pnand %p2606_p8, %p2602_p4 }
 0x711   : > { %2610 = shalt.err (!%p2607_p10)
}
 0x712   : > { %2252 = dma.vmem_to_hbm [thread:$0]  (%p3417_p11), %s3283_s30, 128, %s3281_s24, %s1894_s20   ;;  %v2231_v40 = vpop.f32.mrf.mxu0 }
 0x713 PF: > { %s3418_s26 = sld [smem:[#allocation24_spill]]  ;;  %p2287_p0 = scmp.ge.s32.totalorder %s2725_s23, 2 }
 0x714   : > { %s3419_s10 = sld [smem:[#allocation30_spill]] }
 0x719   : > { %s1921_s19 = sand.u32 1, %s3418_s26  }
 0x71a   : > { %p3420_p6 = scmp.ne.s32.totalorder %s3419_s10, 0  ;;  %s1922_s25 = scalar_lea.sflag [#allocation8], %s1921_s19 }
 0x71c   : > { %p2275_p1 = pnand %p2287_p0, %p3420_p6 }
 0x71e   : > { %p2276_p12 = pneg %p2275_p1 }
 0x720   : > { %2680 = dma.done.wait (%p2276_p12), %s1922_s25, 128  }
 0x721   : > { %2682 = vsyncadd (%p2276_p12), %s1922_s25, 4294967168  ;;  %s31_s23 = sadd.s32 1, %s2725_s23   ;;  %s3421_s7 = sld [smem:[#allocation27_spill]] }
 0x722   : > { %p28_p3 = scmp.ge.s32.totalorder %s31_s23, 6   ;;  %s3422_s30 = sld [smem:[#allocation28_spill]] }
 0x723   : > { %s3423_s13 = smov %s2689_s14  ;;  %s3424_s14 = smov %s2693_s15 }
 0x724   : > { %s3425_s15 = smov %s3012_s0  ;;  %s3426_s16 = smov %s2701_s17 }
 0x725   : > { %s3427_s17 = smov %s2705_s18  ;;  %s3428_s18 = smov %s3009_s2 }
 0x726   : > { %s3429_s19 = smov %s2717_s21  ;;  %s3430_s20 = smov %s2721_s22 }
 0x727   : > { %s3431_s21 = smov %s3421_s7  ;;  %30 = sbr.rel (!%p28_p3) target bundleno = 24 (0x18), region = 160 }
 0x728   : > { %s3432_s22 = smov %s3422_s30 }
 0x72c   :  { %1927 = vsyncpa [#allocation7], 1 }
 0x72d   :  { %1929 = vsyncpa [#allocation7 + $0x1], 1 }
 0x72e   :  { %1930 = vsyncpa [#allocation10], 1 }
 0x72f   :  { %1932 = vsyncpa [#allocation10 + $0x1], 1 }
 0x730   :  { %1933 = vsyncpa [#allocation13], 1 }
 0x731   :  { %1934 = vsyncpa [#allocation16], 1 }
 0x732   :  { %1935 = vsyncpa [#allocation8], 1 }
 0x733   :  { %1937 = vsyncpa [#allocation8 + $0x1], 1 }

</bundles_post_ra>
